<compile_context>
chip_gen: v5e
topology: v5e:2x2
jax: 0.10.0
libtpu: 0.0.40
codegen_flags: <defaults>
</compile_context>

<pallas_src>
import jax
import jax.numpy as jnp
from jax.experimental import pallas as pl
from jax.experimental.pallas import tpu as pltpu


def _make_sst_kernel(num_layers, T, H, unroll):
    """Builds the Pallas kernel body for `num_layers` LSTM layers.

    Ref order: x, [w_ih_l, w_hh_l, b_l] * num_layers, w_scores, b_scores,
               rnn_out, scores, layer_buf_scratch, preact_scratch.
    Gate packing along the last (lane) axis matches PyTorch: i, f, g, o.
    """

    def kernel(*refs):
        idx = 0
        x_ref = refs[idx]; idx += 1
        layer_refs = []
        for _ in range(num_layers):
            layer_refs.append((refs[idx], refs[idx + 1], refs[idx + 2]))
            idx += 3
        w_s_ref, b_s_ref = refs[idx], refs[idx + 1]; idx += 2
        rnn_out_ref, scores_ref = refs[idx], refs[idx + 1]; idx += 2
        buf_sc, pre_sc = refs[idx], refs[idx + 1]

        for l in range(num_layers):
            w_ih_ref, w_hh_ref, b_ref = layer_refs[l]
            in_ref = x_ref if l == 0 else buf_sc
            out_ref = rnn_out_ref if l == num_layers - 1 else buf_sc

            # Hoisted input projection for the whole layer:
            #   preact = in @ w_ih_packed + b   -> (T, 4H)
            # (Full read of in_ref happens here, before any write to out_ref,
            #  so in-place buf_sc reuse across layers is safe.)
            pre_sc[...] = (jnp.dot(in_ref[...], w_ih_ref[...],
                                   preferred_element_type=jnp.float32)
                           + b_ref[...])

            # Hold the recurrent weights in vregs for the whole time loop.
            w_hh = w_hh_ref[...]                      # (H, 4H)

            def step(t, carry, out_ref=out_ref, w_hh=w_hh):
                h, c = carry                          # (1, H) each, in vregs
                gates = pre_sc[pl.ds(t, 1), :] + jnp.dot(
                    h, w_hh, preferred_element_type=jnp.float32)   # (1, 4H)

                sig = jax.nn.sigmoid(gates)           # one EUP launch, 4H lanes
                i_g = sig[:, 0:H]
                f_g = sig[:, H:2 * H]
                o_g = sig[:, 3 * H:4 * H]
                g_g = jnp.tanh(gates[:, 2 * H:3 * H])

                c_new = f_g * c + i_g * g_g
                h_new = o_g * jnp.tanh(c_new)

                out_ref[pl.ds(t, 1), :] = h_new       # layer output at step t
                return (h_new, c_new)

            h0 = jnp.zeros((1, H), jnp.float32)
            c0 = jnp.zeros((1, H), jnp.float32)
            jax.lax.fori_loop(0, T, step, (h0, c0), unroll=unroll)

        # scores = sigmoid(rnn_output @ W_s + b_s), lane-padded to K_pad.
        logits = (jnp.dot(rnn_out_ref[...], w_s_ref[...],
                          preferred_element_type=jnp.float32) + b_s_ref[...])
        scores_ref[...] = jax.nn.sigmoid(logits)

    return kernel


def sst_forward(features, params, *, unroll=True):
    """features: (T, D) float32.  Returns (rnn_output (T,H), proposals (T,K))."""
    T, _ = features.shape
    num_layers = len(params["w_ih"])
    H = params["w_hh"][0].shape[0]           # w_hh: (H, 4H)
    K = params["w_s"].shape[1]
    K_pad = ((K + 127) // 128) * 128          # lane-dense scores writeback

    # Pad the scorer weights to K_pad lanes (zeros beyond K).
    w_s_pad = jnp.zeros((H, K_pad), jnp.float32).at[:, :K].set(params["w_s"])
    b_s_pad = jnp.zeros((1, K_pad), jnp.float32).at[:, :K].set(params["b_s"])

    inputs = [features]
    in_specs = [pl.BlockSpec(features.shape, lambda i: (0, 0))]

    def add_input(arr):
        inputs.append(arr)
        nd = arr.ndim
        in_specs.append(pl.BlockSpec(arr.shape, lambda i, nd=nd: (0,) * nd))

    for l in range(num_layers):
        add_input(params["w_ih"][l])   # (D_l, 4H) gate-packed
        add_input(params["w_hh"][l])   # (H, 4H)   gate-packed
        add_input(params["b"][l])      # (1, 4H)   (= b_ih + b_hh)
    add_input(w_s_pad)                 # (H, K_pad)
    add_input(b_s_pad)                 # (1, K_pad)

    out_shape = (jax.ShapeDtypeStruct((T, H), jnp.float32),
                 jax.ShapeDtypeStruct((T, K_pad), jnp.float32))
    out_specs = [pl.BlockSpec((T, H), lambda i: (0, 0)),
                 pl.BlockSpec((T, K_pad), lambda i: (0, 0))]

    scratch_shapes = [
        pltpu.VMEM((T, H), jnp.float32),       # inter-layer hidden buffer
        pltpu.VMEM((T, 4 * H), jnp.float32),   # hoisted input-projection preacts
    ]

    kernel = _make_sst_kernel(num_layers, T, H, unroll)

    rnn_out, scores_pad = pl.pallas_call(
        kernel,
        out_shape=out_shape,
        grid_spec=pltpu.PrefetchScalarGridSpec(
            num_scalar_prefetch=0,
            grid=(1,),
            in_specs=in_specs,
            out_specs=out_specs,
            scratch_shapes=scratch_shapes),
        compiler_params=pltpu.CompilerParams(
            dimension_semantics=("arbitrary",)),
    )(*inputs)

    return rnn_out, scores_pad[:, :K]


def init_params(key, D, H, K, num_layers):
    """Gate-packed LSTM params: w_ih (D_l,4H), w_hh (H,4H), b (1,4H); i,f,g,o order."""
    scale = 1.0 / float(H) ** 0.5
    keys = jax.random.split(key, num_layers * 4 + 2)
    w_ih, w_hh, b = [], [], []
    ki = 0
    for l in range(num_layers):
        d_in = D if l == 0 else H
        w_ih.append(jax.random.uniform(keys[ki], (d_in, 4 * H), jnp.float32,
                                       -scale, scale)); ki += 1
        w_hh.append(jax.random.uniform(keys[ki], (H, 4 * H), jnp.float32,
                                       -scale, scale)); ki += 1
        b_ih = jax.random.uniform(keys[ki], (1, 4 * H), jnp.float32,
                                  -scale, scale); ki += 1
        b_hh = jax.random.uniform(keys[ki], (1, 4 * H), jnp.float32,
                                  -scale, scale); ki += 1
        b.append(b_ih + b_hh)
    w_s = jax.random.uniform(keys[ki], (H, K), jnp.float32, -scale, scale); ki += 1
    b_s = jax.random.uniform(keys[ki], (1, K), jnp.float32, -scale, scale)
    return {"w_ih": w_ih, "w_hh": w_hh, "b": b, "w_s": w_s, "b_s": b_s}


def sst_reference(features, params):
    """Pure-JAX reference of the same forward pass (for correctness check)."""
    x = features
    for l in range(len(params["w_ih"])):
        w_ih, w_hh, b = params["w_ih"][l], params["w_hh"][l], params["b"][l]
        H = w_hh.shape[0]
        h = jnp.zeros((1, H), jnp.float32)
        c = jnp.zeros((1, H), jnp.float32)
        outs = []
        for t in range(x.shape[0]):
            gates = x[t:t + 1] @ w_ih + h @ w_hh + b      # (1, 4H)
            i_g = jax.nn.sigmoid(gates[:, 0:H])
            f_g = jax.nn.sigmoid(gates[:, H:2 * H])
            g_g = jnp.tanh(gates[:, 2 * H:3 * H])
            o_g = jax.nn.sigmoid(gates[:, 3 * H:4 * H])
            c = f_g * c + i_g * g_g
            h = o_g * jnp.tanh(c)
            outs.append(h)
        x = jnp.concatenate(outs, axis=0)
    rnn_out = x
    scores = jax.nn.sigmoid(rnn_out @ params["w_s"] + params["b_s"])
    return rnn_out, scores


if __name__ == "__main__":
    # Small shapes consistent with the module: T frames of video features,
    # hidden_dim H, K anchor proposals per timestep, 2 LSTM layers.
    T, D, H, K, NUM_LAYERS = 8, 16, 32, 8, 2

    key = jax.random.PRNGKey(0)
    k_feat, k_par = jax.random.split(key)
    features = jax.random.normal(k_feat, (T, D), jnp.float32)
    params = init_params(k_par, D, H, K, NUM_LAYERS)

    rnn_out, proposals = sst_forward(features, params)
    jax.block_until_ready((rnn_out, proposals))

    ref_rnn, ref_prop = sst_reference(features, params)
    assert rnn_out.shape == (T, H) and proposals.shape == (T, K)
    assert jnp.allclose(rnn_out, ref_rnn, atol=2e-3, rtol=2e-3)
    assert jnp.allclose(proposals, ref_prop, atol=2e-3, rtol=2e-3)

    print("KERNEL_OK")
</pallas_src>

<mosaic_0001>
module attributes {stable_mosaic.version = 11 : i64} {
  func.func @kernel(%arg0: i32, %arg1: memref<8x16xf32, #tpu.memory_space<vmem>>, %arg2: memref<16x128xf32, #tpu.memory_space<vmem>>, %arg3: memref<32x128xf32, #tpu.memory_space<vmem>>, %arg4: memref<1x128xf32, #tpu.memory_space<vmem>>, %arg5: memref<32x128xf32, #tpu.memory_space<vmem>>, %arg6: memref<32x128xf32, #tpu.memory_space<vmem>>, %arg7: memref<1x128xf32, #tpu.memory_space<vmem>>, %arg8: memref<32x128xf32, #tpu.memory_space<vmem>>, %arg9: memref<1x128xf32, #tpu.memory_space<vmem>>, %arg10: memref<8x32xf32, #tpu.memory_space<vmem>>, %arg11: memref<8x128xf32, #tpu.memory_space<vmem>>, %arg12: memref<8x32xf32, #tpu.memory_space<vmem>>, %arg13: memref<8x128xf32, #tpu.memory_space<vmem>>) attributes {dimension_semantics = [#tpu.dimension_semantics<arbitrary>], iteration_bounds = array<i64: 1>, scalar_prefetch = 0 : i64, scratch_operands = 2 : i64, tpu.core_type = #tpu.core_type<tc>, window_params = [{pipeline_mode = #tpu.pipeline_mode<synchronous>, transform_indices = @transform_0, window_bounds = array<i64: 8, 16>}, {pipeline_mode = #tpu.pipeline_mode<synchronous>, transform_indices = @transform_1, window_bounds = array<i64: 16, 128>}, {pipeline_mode = #tpu.pipeline_mode<synchronous>, transform_indices = @transform_2, window_bounds = array<i64: 32, 128>}, {pipeline_mode = #tpu.pipeline_mode<synchronous>, transform_indices = @transform_3, window_bounds = array<i64: 1, 128>}, {pipeline_mode = #tpu.pipeline_mode<synchronous>, transform_indices = @transform_4, window_bounds = array<i64: 32, 128>}, {pipeline_mode = #tpu.pipeline_mode<synchronous>, transform_indices = @transform_5, window_bounds = array<i64: 32, 128>}, {pipeline_mode = #tpu.pipeline_mode<synchronous>, transform_indices = @transform_6, window_bounds = array<i64: 1, 128>}, {pipeline_mode = #tpu.pipeline_mode<synchronous>, transform_indices = @transform_7, window_bounds = array<i64: 32, 128>}, {pipeline_mode = #tpu.pipeline_mode<synchronous>, transform_indices = @transform_8, window_bounds = array<i64: 1, 128>}, {pipeline_mode = #tpu.pipeline_mode<synchronous>, transform_indices = @transform_9, window_bounds = array<i64: 8, 32>}, {pipeline_mode = #tpu.pipeline_mode<synchronous>, transform_indices = @transform_10, window_bounds = array<i64: 8, 128>}]} {
    %c0 = arith.constant 0 : index
    %c0_0 = arith.constant 0 : index
    %0 = vector.load %arg1[%c0, %c0_0] : memref<8x16xf32, #tpu.memory_space<vmem>>, vector<8x16xf32>
    %c0_1 = arith.constant 0 : index
    %c0_2 = arith.constant 0 : index
    %1 = vector.load %arg2[%c0_1, %c0_2] : memref<16x128xf32, #tpu.memory_space<vmem>>, vector<16x128xf32>
    %cst = arith.constant dense<0.000000e+00> : vector<8x128xf32>
    %2 = tpu.matmul %0, %1, %cst {dimension_numbers = #tpu.dot_dimension_numbers<[1], [0], [0], [1], [0, 0, 1, 1], [], []>} : vector<8x16xf32>, vector<16x128xf32>, vector<8x128xf32> -> vector<8x128xf32>
    %c0_3 = arith.constant 0 : index
    %c0_4 = arith.constant 0 : index
    %3 = vector.load %arg4[%c0_3, %c0_4] : memref<1x128xf32, #tpu.memory_space<vmem>>, vector<1x128xf32>
    %4 = vector.broadcast %3 : vector<1x128xf32> to vector<8x128xf32>
    %5 = arith.addf %2, %4 : vector<8x128xf32>
    %c0_5 = arith.constant 0 : index
    %c0_6 = arith.constant 0 : index
    %6 = vector.load %arg13[%c0_5, %c0_6] : memref<8x128xf32, #tpu.memory_space<vmem>>, vector<8x128xf32>
    tpu.vector_store %arg13[%c0_5, %c0_6], %5 {strides = array<i32>} : memref<8x128xf32, #tpu.memory_space<vmem>>, vector<8x128xf32>,
    %c0_7 = arith.constant 0 : index
    %c0_8 = arith.constant 0 : index
    %7 = vector.load %arg3[%c0_7, %c0_8] : memref<32x128xf32, #tpu.memory_space<vmem>>, vector<32x128xf32>
    %cst_9 = arith.constant 0.000000e+00 : f32
    %8 = vector.broadcast %cst_9 : f32 to vector<1x32xf32>
    %cst_10 = arith.constant 0.000000e+00 : f32
    %9 = vector.broadcast %cst_10 : f32 to vector<1x32xf32>
    %c0_i32 = arith.constant 0 : i32
    %10 = arith.index_cast %c0_i32 : i32 to index
    %c0_11 = arith.constant 0 : index
    %11 = vector.load %arg13[%10, %c0_11] : memref<8x128xf32, #tpu.memory_space<vmem>>, vector<1x128xf32>
    %cst_12 = arith.constant dense<0.000000e+00> : vector<1x128xf32>
    %12 = tpu.matmul %8, %7, %cst_12 {dimension_numbers = #tpu.dot_dimension_numbers<[1], [0], [0], [1], [0, 0, 1, 1], [], []>} : vector<1x32xf32>, vector<32x128xf32>, vector<1x128xf32> -> vector<1x128xf32>
    %13 = arith.addf %11, %12 : vector<1x128xf32>
    %14 = arith.negf %13 : vector<1x128xf32>
    %15 = math.exp %14 : vector<1x128xf32>
    %cst_13 = arith.constant 1.000000e+00 : f32
    %16 = vector.broadcast %cst_13 : f32 to vector<1x128xf32>
    %17 = arith.addf %16, %15 : vector<1x128xf32>
    %18 = arith.divf %16, %17 : vector<1x128xf32>
    %19 = vector.extract_strided_slice %18 {offsets = [0, 0], sizes = [1, 32], strides = [1, 1]} : vector<1x128xf32> to vector<1x32xf32>
    %20 = vector.extract_strided_slice %18 {offsets = [0, 32], sizes = [1, 32], strides = [1, 1]} : vector<1x128xf32> to vector<1x32xf32>
    %21 = vector.extract_strided_slice %18 {offsets = [0, 96], sizes = [1, 32], strides = [1, 1]} : vector<1x128xf32> to vector<1x32xf32>
    %22 = vector.extract_strided_slice %13 {offsets = [0, 64], sizes = [1, 32], strides = [1, 1]} : vector<1x128xf32> to vector<1x32xf32>
    %23 = math.tanh %22 : vector<1x32xf32>
    %24 = arith.mulf %20, %9 : vector<1x32xf32>
    %25 = arith.mulf %19, %23 : vector<1x32xf32>
    %26 = arith.addf %24, %25 : vector<1x32xf32>
    %27 = math.tanh %26 : vector<1x32xf32>
    %28 = arith.mulf %21, %27 : vector<1x32xf32>
    %29 = arith.index_cast %c0_i32 : i32 to index
    %c0_14 = arith.constant 0 : index
    %30 = vector.load %arg12[%29, %c0_14] : memref<8x32xf32, #tpu.memory_space<vmem>>, vector<1x32xf32>
    tpu.vector_store %arg12[%29, %c0_14], %28 {strides = array<i32>} : memref<8x32xf32, #tpu.memory_space<vmem>>, vector<1x32xf32>,
    %c1_i32 = arith.constant 1 : i32
    %31 = arith.index_cast %c1_i32 : i32 to index
    %c0_15 = arith.constant 0 : index
    %32 = vector.load %arg13[%31, %c0_15] : memref<8x128xf32, #tpu.memory_space<vmem>>, vector<1x128xf32>
    %cst_16 = arith.constant dense<0.000000e+00> : vector<1x128xf32>
    %33 = tpu.matmul %28, %7, %cst_16 {dimension_numbers = #tpu.dot_dimension_numbers<[1], [0], [0], [1], [0, 0, 1, 1], [], []>} : vector<1x32xf32>, vector<32x128xf32>, vector<1x128xf32> -> vector<1x128xf32>
    %34 = arith.addf %32, %33 : vector<1x128xf32>
    %35 = arith.negf %34 : vector<1x128xf32>
    %36 = math.exp %35 : vector<1x128xf32>
    %cst_17 = arith.constant 1.000000e+00 : f32
    %37 = vector.broadcast %cst_17 : f32 to vector<1x128xf32>
    %38 = arith.addf %37, %36 : vector<1x128xf32>
    %39 = arith.divf %37, %38 : vector<1x128xf32>
    %40 = vector.extract_strided_slice %39 {offsets = [0, 0], sizes = [1, 32], strides = [1, 1]} : vector<1x128xf32> to vector<1x32xf32>
    %41 = vector.extract_strided_slice %39 {offsets = [0, 32], sizes = [1, 32], strides = [1, 1]} : vector<1x128xf32> to vector<1x32xf32>
    %42 = vector.extract_strided_slice %39 {offsets = [0, 96], sizes = [1, 32], strides = [1, 1]} : vector<1x128xf32> to vector<1x32xf32>
    %43 = vector.extract_strided_slice %34 {offsets = [0, 64], sizes = [1, 32], strides = [1, 1]} : vector<1x128xf32> to vector<1x32xf32>
    %44 = math.tanh %43 : vector<1x32xf32>
    %45 = arith.mulf %41, %26 : vector<1x32xf32>
    %46 = arith.mulf %40, %44 : vector<1x32xf32>
    %47 = arith.addf %45, %46 : vector<1x32xf32>
    %48 = math.tanh %47 : vector<1x32xf32>
    %49 = arith.mulf %42, %48 : vector<1x32xf32>
    %50 = arith.index_cast %c1_i32 : i32 to index
    %c0_18 = arith.constant 0 : index
    %51 = vector.load %arg12[%50, %c0_18] : memref<8x32xf32, #tpu.memory_space<vmem>>, vector<1x32xf32>
    tpu.vector_store %arg12[%50, %c0_18], %49 {strides = array<i32>} : memref<8x32xf32, #tpu.memory_space<vmem>>, vector<1x32xf32>,
    %c2_i32 = arith.constant 2 : i32
    %52 = arith.index_cast %c2_i32 : i32 to index
    %c0_19 = arith.constant 0 : index
    %53 = vector.load %arg13[%52, %c0_19] : memref<8x128xf32, #tpu.memory_space<vmem>>, vector<1x128xf32>
    %cst_20 = arith.constant dense<0.000000e+00> : vector<1x128xf32>
    %54 = tpu.matmul %49, %7, %cst_20 {dimension_numbers = #tpu.dot_dimension_numbers<[1], [0], [0], [1], [0, 0, 1, 1], [], []>} : vector<1x32xf32>, vector<32x128xf32>, vector<1x128xf32> -> vector<1x128xf32>
    %55 = arith.addf %53, %54 : vector<1x128xf32>
    %56 = arith.negf %55 : vector<1x128xf32>
    %57 = math.exp %56 : vector<1x128xf32>
    %cst_21 = arith.constant 1.000000e+00 : f32
    %58 = vector.broadcast %cst_21 : f32 to vector<1x128xf32>
    %59 = arith.addf %58, %57 : vector<1x128xf32>
    %60 = arith.divf %58, %59 : vector<1x128xf32>
    %61 = vector.extract_strided_slice %60 {offsets = [0, 0], sizes = [1, 32], strides = [1, 1]} : vector<1x128xf32> to vector<1x32xf32>
    %62 = vector.extract_strided_slice %60 {offsets = [0, 32], sizes = [1, 32], strides = [1, 1]} : vector<1x128xf32> to vector<1x32xf32>
    %63 = vector.extract_strided_slice %60 {offsets = [0, 96], sizes = [1, 32], strides = [1, 1]} : vector<1x128xf32> to vector<1x32xf32>
    %64 = vector.extract_strided_slice %55 {offsets = [0, 64], sizes = [1, 32], strides = [1, 1]} : vector<1x128xf32> to vector<1x32xf32>
    %65 = math.tanh %64 : vector<1x32xf32>
    %66 = arith.mulf %62, %47 : vector<1x32xf32>
    %67 = arith.mulf %61, %65 : vector<1x32xf32>
    %68 = arith.addf %66, %67 : vector<1x32xf32>
    %69 = math.tanh %68 : vector<1x32xf32>
    %70 = arith.mulf %63, %69 : vector<1x32xf32>
    %71 = arith.index_cast %c2_i32 : i32 to index
    %c0_22 = arith.constant 0 : index
    %72 = vector.load %arg12[%71, %c0_22] : memref<8x32xf32, #tpu.memory_space<vmem>>, vector<1x32xf32>
    tpu.vector_store %arg12[%71, %c0_22], %70 {strides = array<i32>} : memref<8x32xf32, #tpu.memory_space<vmem>>, vector<1x32xf32>,
    %c3_i32 = arith.constant 3 : i32
    %73 = arith.index_cast %c3_i32 : i32 to index
    %c0_23 = arith.constant 0 : index
    %74 = vector.load %arg13[%73, %c0_23] : memref<8x128xf32, #tpu.memory_space<vmem>>, vector<1x128xf32>
    %cst_24 = arith.constant dense<0.000000e+00> : vector<1x128xf32>
    %75 = tpu.matmul %70, %7, %cst_24 {dimension_numbers = #tpu.dot_dimension_numbers<[1], [0], [0], [1], [0, 0, 1, 1], [], []>} : vector<1x32xf32>, vector<32x128xf32>, vector<1x128xf32> -> vector<1x128xf32>
    %76 = arith.addf %74, %75 : vector<1x128xf32>
    %77 = arith.negf %76 : vector<1x128xf32>
    %78 = math.exp %77 : vector<1x128xf32>
    %cst_25 = arith.constant 1.000000e+00 : f32
    %79 = vector.broadcast %cst_25 : f32 to vector<1x128xf32>
    %80 = arith.addf %79, %78 : vector<1x128xf32>
    %81 = arith.divf %79, %80 : vector<1x128xf32>
    %82 = vector.extract_strided_slice %81 {offsets = [0, 0], sizes = [1, 32], strides = [1, 1]} : vector<1x128xf32> to vector<1x32xf32>
    %83 = vector.extract_strided_slice %81 {offsets = [0, 32], sizes = [1, 32], strides = [1, 1]} : vector<1x128xf32> to vector<1x32xf32>
    %84 = vector.extract_strided_slice %81 {offsets = [0, 96], sizes = [1, 32], strides = [1, 1]} : vector<1x128xf32> to vector<1x32xf32>
    %85 = vector.extract_strided_slice %76 {offsets = [0, 64], sizes = [1, 32], strides = [1, 1]} : vector<1x128xf32> to vector<1x32xf32>
    %86 = math.tanh %85 : vector<1x32xf32>
    %87 = arith.mulf %83, %68 : vector<1x32xf32>
    %88 = arith.mulf %82, %86 : vector<1x32xf32>
    %89 = arith.addf %87, %88 : vector<1x32xf32>
    %90 = math.tanh %89 : vector<1x32xf32>
    %91 = arith.mulf %84, %90 : vector<1x32xf32>
    %92 = arith.index_cast %c3_i32 : i32 to index
    %c0_26 = arith.constant 0 : index
    %93 = vector.load %arg12[%92, %c0_26] : memref<8x32xf32, #tpu.memory_space<vmem>>, vector<1x32xf32>
    tpu.vector_store %arg12[%92, %c0_26], %91 {strides = array<i32>} : memref<8x32xf32, #tpu.memory_space<vmem>>, vector<1x32xf32>,
    %c4_i32 = arith.constant 4 : i32
    %94 = arith.index_cast %c4_i32 : i32 to index
    %c0_27 = arith.constant 0 : index
    %95 = vector.load %arg13[%94, %c0_27] : memref<8x128xf32, #tpu.memory_space<vmem>>, vector<1x128xf32>
    %cst_28 = arith.constant dense<0.000000e+00> : vector<1x128xf32>
    %96 = tpu.matmul %91, %7, %cst_28 {dimension_numbers = #tpu.dot_dimension_numbers<[1], [0], [0], [1], [0, 0, 1, 1], [], []>} : vector<1x32xf32>, vector<32x128xf32>, vector<1x128xf32> -> vector<1x128xf32>
    %97 = arith.addf %95, %96 : vector<1x128xf32>
    %98 = arith.negf %97 : vector<1x128xf32>
    %99 = math.exp %98 : vector<1x128xf32>
    %cst_29 = arith.constant 1.000000e+00 : f32
    %100 = vector.broadcast %cst_29 : f32 to vector<1x128xf32>
    %101 = arith.addf %100, %99 : vector<1x128xf32>
    %102 = arith.divf %100, %101 : vector<1x128xf32>
    %103 = vector.extract_strided_slice %102 {offsets = [0, 0], sizes = [1, 32], strides = [1, 1]} : vector<1x128xf32> to vector<1x32xf32>
    %104 = vector.extract_strided_slice %102 {offsets = [0, 32], sizes = [1, 32], strides = [1, 1]} : vector<1x128xf32> to vector<1x32xf32>
    %105 = vector.extract_strided_slice %102 {offsets = [0, 96], sizes = [1, 32], strides = [1, 1]} : vector<1x128xf32> to vector<1x32xf32>
    %106 = vector.extract_strided_slice %97 {offsets = [0, 64], sizes = [1, 32], strides = [1, 1]} : vector<1x128xf32> to vector<1x32xf32>
    %107 = math.tanh %106 : vector<1x32xf32>
    %108 = arith.mulf %104, %89 : vector<1x32xf32>
    %109 = arith.mulf %103, %107 : vector<1x32xf32>
    %110 = arith.addf %108, %109 : vector<1x32xf32>
    %111 = math.tanh %110 : vector<1x32xf32>
    %112 = arith.mulf %105, %111 : vector<1x32xf32>
    %113 = arith.index_cast %c4_i32 : i32 to index
    %c0_30 = arith.constant 0 : index
    %114 = vector.load %arg12[%113, %c0_30] : memref<8x32xf32, #tpu.memory_space<vmem>>, vector<1x32xf32>
    tpu.vector_store %arg12[%113, %c0_30], %112 {strides = array<i32>} : memref<8x32xf32, #tpu.memory_space<vmem>>, vector<1x32xf32>,
    %c5_i32 = arith.constant 5 : i32
    %115 = arith.index_cast %c5_i32 : i32 to index
    %c0_31 = arith.constant 0 : index
    %116 = vector.load %arg13[%115, %c0_31] : memref<8x128xf32, #tpu.memory_space<vmem>>, vector<1x128xf32>
    %cst_32 = arith.constant dense<0.000000e+00> : vector<1x128xf32>
    %117 = tpu.matmul %112, %7, %cst_32 {dimension_numbers = #tpu.dot_dimension_numbers<[1], [0], [0], [1], [0, 0, 1, 1], [], []>} : vector<1x32xf32>, vector<32x128xf32>, vector<1x128xf32> -> vector<1x128xf32>
    %118 = arith.addf %116, %117 : vector<1x128xf32>
    %119 = arith.negf %118 : vector<1x128xf32>
    %120 = math.exp %119 : vector<1x128xf32>
    %cst_33 = arith.constant 1.000000e+00 : f32
    %121 = vector.broadcast %cst_33 : f32 to vector<1x128xf32>
    %122 = arith.addf %121, %120 : vector<1x128xf32>
    %123 = arith.divf %121, %122 : vector<1x128xf32>
    %124 = vector.extract_strided_slice %123 {offsets = [0, 0], sizes = [1, 32], strides = [1, 1]} : vector<1x128xf32> to vector<1x32xf32>
    %125 = vector.extract_strided_slice %123 {offsets = [0, 32], sizes = [1, 32], strides = [1, 1]} : vector<1x128xf32> to vector<1x32xf32>
    %126 = vector.extract_strided_slice %123 {offsets = [0, 96], sizes = [1, 32], strides = [1, 1]} : vector<1x128xf32> to vector<1x32xf32>
    %127 = vector.extract_strided_slice %118 {offsets = [0, 64], sizes = [1, 32], strides = [1, 1]} : vector<1x128xf32> to vector<1x32xf32>
    %128 = math.tanh %127 : vector<1x32xf32>
    %129 = arith.mulf %125, %110 : vector<1x32xf32>
    %130 = arith.mulf %124, %128 : vector<1x32xf32>
    %131 = arith.addf %129, %130 : vector<1x32xf32>
    %132 = math.tanh %131 : vector<1x32xf32>
    %133 = arith.mulf %126, %132 : vector<1x32xf32>
    %134 = arith.index_cast %c5_i32 : i32 to index
    %c0_34 = arith.constant 0 : index
    %135 = vector.load %arg12[%134, %c0_34] : memref<8x32xf32, #tpu.memory_space<vmem>>, vector<1x32xf32>
    tpu.vector_store %arg12[%134, %c0_34], %133 {strides = array<i32>} : memref<8x32xf32, #tpu.memory_space<vmem>>, vector<1x32xf32>,
    %c6_i32 = arith.constant 6 : i32
    %136 = arith.index_cast %c6_i32 : i32 to index
    %c0_35 = arith.constant 0 : index
    %137 = vector.load %arg13[%136, %c0_35] : memref<8x128xf32, #tpu.memory_space<vmem>>, vector<1x128xf32>
    %cst_36 = arith.constant dense<0.000000e+00> : vector<1x128xf32>
    %138 = tpu.matmul %133, %7, %cst_36 {dimension_numbers = #tpu.dot_dimension_numbers<[1], [0], [0], [1], [0, 0, 1, 1], [], []>} : vector<1x32xf32>, vector<32x128xf32>, vector<1x128xf32> -> vector<1x128xf32>
    %139 = arith.addf %137, %138 : vector<1x128xf32>
    %140 = arith.negf %139 : vector<1x128xf32>
    %141 = math.exp %140 : vector<1x128xf32>
    %cst_37 = arith.constant 1.000000e+00 : f32
    %142 = vector.broadcast %cst_37 : f32 to vector<1x128xf32>
    %143 = arith.addf %142, %141 : vector<1x128xf32>
    %144 = arith.divf %142, %143 : vector<1x128xf32>
    %145 = vector.extract_strided_slice %144 {offsets = [0, 0], sizes = [1, 32], strides = [1, 1]} : vector<1x128xf32> to vector<1x32xf32>
    %146 = vector.extract_strided_slice %144 {offsets = [0, 32], sizes = [1, 32], strides = [1, 1]} : vector<1x128xf32> to vector<1x32xf32>
    %147 = vector.extract_strided_slice %144 {offsets = [0, 96], sizes = [1, 32], strides = [1, 1]} : vector<1x128xf32> to vector<1x32xf32>
    %148 = vector.extract_strided_slice %139 {offsets = [0, 64], sizes = [1, 32], strides = [1, 1]} : vector<1x128xf32> to vector<1x32xf32>
    %149 = math.tanh %148 : vector<1x32xf32>
    %150 = arith.mulf %146, %131 : vector<1x32xf32>
    %151 = arith.mulf %145, %149 : vector<1x32xf32>
    %152 = arith.addf %150, %151 : vector<1x32xf32>
    %153 = math.tanh %152 : vector<1x32xf32>
    %154 = arith.mulf %147, %153 : vector<1x32xf32>
    %155 = arith.index_cast %c6_i32 : i32 to index
    %c0_38 = arith.constant 0 : index
    %156 = vector.load %arg12[%155, %c0_38] : memref<8x32xf32, #tpu.memory_space<vmem>>, vector<1x32xf32>
    tpu.vector_store %arg12[%155, %c0_38], %154 {strides = array<i32>} : memref<8x32xf32, #tpu.memory_space<vmem>>, vector<1x32xf32>,
    %c7_i32 = arith.constant 7 : i32
    %157 = arith.index_cast %c7_i32 : i32 to index
    %c0_39 = arith.constant 0 : index
    %158 = vector.load %arg13[%157, %c0_39] : memref<8x128xf32, #tpu.memory_space<vmem>>, vector<1x128xf32>
    %cst_40 = arith.constant dense<0.000000e+00> : vector<1x128xf32>
    %159 = tpu.matmul %154, %7, %cst_40 {dimension_numbers = #tpu.dot_dimension_numbers<[1], [0], [0], [1], [0, 0, 1, 1], [], []>} : vector<1x32xf32>, vector<32x128xf32>, vector<1x128xf32> -> vector<1x128xf32>
    %160 = arith.addf %158, %159 : vector<1x128xf32>
    %161 = arith.negf %160 : vector<1x128xf32>
    %162 = math.exp %161 : vector<1x128xf32>
    %cst_41 = arith.constant 1.000000e+00 : f32
    %163 = vector.broadcast %cst_41 : f32 to vector<1x128xf32>
    %164 = arith.addf %163, %162 : vector<1x128xf32>
    %165 = arith.divf %163, %164 : vector<1x128xf32>
    %166 = vector.extract_strided_slice %165 {offsets = [0, 0], sizes = [1, 32], strides = [1, 1]} : vector<1x128xf32> to vector<1x32xf32>
    %167 = vector.extract_strided_slice %165 {offsets = [0, 32], sizes = [1, 32], strides = [1, 1]} : vector<1x128xf32> to vector<1x32xf32>
    %168 = vector.extract_strided_slice %165 {offsets = [0, 96], sizes = [1, 32], strides = [1, 1]} : vector<1x128xf32> to vector<1x32xf32>
    %169 = vector.extract_strided_slice %160 {offsets = [0, 64], sizes = [1, 32], strides = [1, 1]} : vector<1x128xf32> to vector<1x32xf32>
    %170 = math.tanh %169 : vector<1x32xf32>
    %171 = arith.mulf %167, %152 : vector<1x32xf32>
    %172 = arith.mulf %166, %170 : vector<1x32xf32>
    %173 = arith.addf %171, %172 : vector<1x32xf32>
    %174 = math.tanh %173 : vector<1x32xf32>
    %175 = arith.mulf %168, %174 : vector<1x32xf32>
    %176 = arith.index_cast %c7_i32 : i32 to index
    %c0_42 = arith.constant 0 : index
    %177 = vector.load %arg12[%176, %c0_42] : memref<8x32xf32, #tpu.memory_space<vmem>>, vector<1x32xf32>
    tpu.vector_store %arg12[%176, %c0_42], %175 {strides = array<i32>} : memref<8x32xf32, #tpu.memory_space<vmem>>, vector<1x32xf32>,
    %c8_i32 = arith.constant 8 : i32
    %c0_43 = arith.constant 0 : index
    %c0_44 = arith.constant 0 : index
    %178 = vector.load %arg12[%c0_43, %c0_44] : memref<8x32xf32, #tpu.memory_space<vmem>>, vector<8x32xf32>
    %c0_45 = arith.constant 0 : index
    %c0_46 = arith.constant 0 : index
    %179 = vector.load %arg5[%c0_45, %c0_46] : memref<32x128xf32, #tpu.memory_space<vmem>>, vector<32x128xf32>
    %cst_47 = arith.constant dense<0.000000e+00> : vector<8x128xf32>
    %180 = tpu.matmul %178, %179, %cst_47 {dimension_numbers = #tpu.dot_dimension_numbers<[1], [0], [0], [1], [0, 0, 1, 1], [], []>} : vector<8x32xf32>, vector<32x128xf32>, vector<8x128xf32> -> vector<8x128xf32>
    %c0_48 = arith.constant 0 : index
    %c0_49 = arith.constant 0 : index
    %181 = vector.load %arg7[%c0_48, %c0_49] : memref<1x128xf32, #tpu.memory_space<vmem>>, vector<1x128xf32>
    %182 = vector.broadcast %181 : vector<1x128xf32> to vector<8x128xf32>
    %183 = arith.addf %180, %182 : vector<8x128xf32>
    %c0_50 = arith.constant 0 : index
    %c0_51 = arith.constant 0 : index
    %184 = vector.load %arg13[%c0_50, %c0_51] : memref<8x128xf32, #tpu.memory_space<vmem>>, vector<8x128xf32>
    tpu.vector_store %arg13[%c0_50, %c0_51], %183 {strides = array<i32>} : memref<8x128xf32, #tpu.memory_space<vmem>>, vector<8x128xf32>,
    %c0_52 = arith.constant 0 : index
    %c0_53 = arith.constant 0 : index
    %185 = vector.load %arg6[%c0_52, %c0_53] : memref<32x128xf32, #tpu.memory_space<vmem>>, vector<32x128xf32>
    %cst_54 = arith.constant 0.000000e+00 : f32
    %186 = vector.broadcast %cst_54 : f32 to vector<1x32xf32>
    %cst_55 = arith.constant 0.000000e+00 : f32
    %187 = vector.broadcast %cst_55 : f32 to vector<1x32xf32>
    %c0_i32_56 = arith.constant 0 : i32
    %188 = arith.index_cast %c0_i32_56 : i32 to index
    %c0_57 = arith.constant 0 : index
    %189 = vector.load %arg13[%188, %c0_57] : memref<8x128xf32, #tpu.memory_space<vmem>>, vector<1x128xf32>
    %cst_58 = arith.constant dense<0.000000e+00> : vector<1x128xf32>
    %190 = tpu.matmul %186, %185, %cst_58 {dimension_numbers = #tpu.dot_dimension_numbers<[1], [0], [0], [1], [0, 0, 1, 1], [], []>} : vector<1x32xf32>, vector<32x128xf32>, vector<1x128xf32> -> vector<1x128xf32>
    %191 = arith.addf %189, %190 : vector<1x128xf32>
    %192 = arith.negf %191 : vector<1x128xf32>
    %193 = math.exp %192 : vector<1x128xf32>
    %cst_59 = arith.constant 1.000000e+00 : f32
    %194 = vector.broadcast %cst_59 : f32 to vector<1x128xf32>
    %195 = arith.addf %194, %193 : vector<1x128xf32>
    %196 = arith.divf %194, %195 : vector<1x128xf32>
    %197 = vector.extract_strided_slice %196 {offsets = [0, 0], sizes = [1, 32], strides = [1, 1]} : vector<1x128xf32> to vector<1x32xf32>
    %198 = vector.extract_strided_slice %196 {offsets = [0, 32], sizes = [1, 32], strides = [1, 1]} : vector<1x128xf32> to vector<1x32xf32>
    %199 = vector.extract_strided_slice %196 {offsets = [0, 96], sizes = [1, 32], strides = [1, 1]} : vector<1x128xf32> to vector<1x32xf32>
    %200 = vector.extract_strided_slice %191 {offsets = [0, 64], sizes = [1, 32], strides = [1, 1]} : vector<1x128xf32> to vector<1x32xf32>
    %201 = math.tanh %200 : vector<1x32xf32>
    %202 = arith.mulf %198, %187 : vector<1x32xf32>
    %203 = arith.mulf %197, %201 : vector<1x32xf32>
    %204 = arith.addf %202, %203 : vector<1x32xf32>
    %205 = math.tanh %204 : vector<1x32xf32>
    %206 = arith.mulf %199, %205 : vector<1x32xf32>
    %207 = arith.index_cast %c0_i32_56 : i32 to index
    %c0_60 = arith.constant 0 : index
    %208 = vector.load %arg10[%207, %c0_60] : memref<8x32xf32, #tpu.memory_space<vmem>>, vector<1x32xf32>
    tpu.vector_store %arg10[%207, %c0_60], %206 {strides = array<i32>} : memref<8x32xf32, #tpu.memory_space<vmem>>, vector<1x32xf32>,
    %c1_i32_61 = arith.constant 1 : i32
    %209 = arith.index_cast %c1_i32_61 : i32 to index
    %c0_62 = arith.constant 0 : index
    %210 = vector.load %arg13[%209, %c0_62] : memref<8x128xf32, #tpu.memory_space<vmem>>, vector<1x128xf32>
    %cst_63 = arith.constant dense<0.000000e+00> : vector<1x128xf32>
    %211 = tpu.matmul %206, %185, %cst_63 {dimension_numbers = #tpu.dot_dimension_numbers<[1], [0], [0], [1], [0, 0, 1, 1], [], []>} : vector<1x32xf32>, vector<32x128xf32>, vector<1x128xf32> -> vector<1x128xf32>
    %212 = arith.addf %210, %211 : vector<1x128xf32>
    %213 = arith.negf %212 : vector<1x128xf32>
    %214 = math.exp %213 : vector<1x128xf32>
    %cst_64 = arith.constant 1.000000e+00 : f32
    %215 = vector.broadcast %cst_64 : f32 to vector<1x128xf32>
    %216 = arith.addf %215, %214 : vector<1x128xf32>
    %217 = arith.divf %215, %216 : vector<1x128xf32>
    %218 = vector.extract_strided_slice %217 {offsets = [0, 0], sizes = [1, 32], strides = [1, 1]} : vector<1x128xf32> to vector<1x32xf32>
    %219 = vector.extract_strided_slice %217 {offsets = [0, 32], sizes = [1, 32], strides = [1, 1]} : vector<1x128xf32> to vector<1x32xf32>
    %220 = vector.extract_strided_slice %217 {offsets = [0, 96], sizes = [1, 32], strides = [1, 1]} : vector<1x128xf32> to vector<1x32xf32>
    %221 = vector.extract_strided_slice %212 {offsets = [0, 64], sizes = [1, 32], strides = [1, 1]} : vector<1x128xf32> to vector<1x32xf32>
    %222 = math.tanh %221 : vector<1x32xf32>
    %223 = arith.mulf %219, %204 : vector<1x32xf32>
    %224 = arith.mulf %218, %222 : vector<1x32xf32>
    %225 = arith.addf %223, %224 : vector<1x32xf32>
    %226 = math.tanh %225 : vector<1x32xf32>
    %227 = arith.mulf %220, %226 : vector<1x32xf32>
    %228 = arith.index_cast %c1_i32_61 : i32 to index
    %c0_65 = arith.constant 0 : index
    %229 = vector.load %arg10[%228, %c0_65] : memref<8x32xf32, #tpu.memory_space<vmem>>, vector<1x32xf32>
    tpu.vector_store %arg10[%228, %c0_65], %227 {strides = array<i32>} : memref<8x32xf32, #tpu.memory_space<vmem>>, vector<1x32xf32>,
    %c2_i32_66 = arith.constant 2 : i32
    %230 = arith.index_cast %c2_i32_66 : i32 to index
    %c0_67 = arith.constant 0 : index
    %231 = vector.load %arg13[%230, %c0_67] : memref<8x128xf32, #tpu.memory_space<vmem>>, vector<1x128xf32>
    %cst_68 = arith.constant dense<0.000000e+00> : vector<1x128xf32>
    %232 = tpu.matmul %227, %185, %cst_68 {dimension_numbers = #tpu.dot_dimension_numbers<[1], [0], [0], [1], [0, 0, 1, 1], [], []>} : vector<1x32xf32>, vector<32x128xf32>, vector<1x128xf32> -> vector<1x128xf32>
    %233 = arith.addf %231, %232 : vector<1x128xf32>
    %234 = arith.negf %233 : vector<1x128xf32>
    %235 = math.exp %234 : vector<1x128xf32>
    %cst_69 = arith.constant 1.000000e+00 : f32
    %236 = vector.broadcast %cst_69 : f32 to vector<1x128xf32>
    %237 = arith.addf %236, %235 : vector<1x128xf32>
    %238 = arith.divf %236, %237 : vector<1x128xf32>
    %239 = vector.extract_strided_slice %238 {offsets = [0, 0], sizes = [1, 32], strides = [1, 1]} : vector<1x128xf32> to vector<1x32xf32>
    %240 = vector.extract_strided_slice %238 {offsets = [0, 32], sizes = [1, 32], strides = [1, 1]} : vector<1x128xf32> to vector<1x32xf32>
    %241 = vector.extract_strided_slice %238 {offsets = [0, 96], sizes = [1, 32], strides = [1, 1]} : vector<1x128xf32> to vector<1x32xf32>
    %242 = vector.extract_strided_slice %233 {offsets = [0, 64], sizes = [1, 32], strides = [1, 1]} : vector<1x128xf32> to vector<1x32xf32>
    %243 = math.tanh %242 : vector<1x32xf32>
    %244 = arith.mulf %240, %225 : vector<1x32xf32>
    %245 = arith.mulf %239, %243 : vector<1x32xf32>
    %246 = arith.addf %244, %245 : vector<1x32xf32>
    %247 = math.tanh %246 : vector<1x32xf32>
    %248 = arith.mulf %241, %247 : vector<1x32xf32>
    %249 = arith.index_cast %c2_i32_66 : i32 to index
    %c0_70 = arith.constant 0 : index
    %250 = vector.load %arg10[%249, %c0_70] : memref<8x32xf32, #tpu.memory_space<vmem>>, vector<1x32xf32>
    tpu.vector_store %arg10[%249, %c0_70], %248 {strides = array<i32>} : memref<8x32xf32, #tpu.memory_space<vmem>>, vector<1x32xf32>,
    %c3_i32_71 = arith.constant 3 : i32
    %251 = arith.index_cast %c3_i32_71 : i32 to index
    %c0_72 = arith.constant 0 : index
    %252 = vector.load %arg13[%251, %c0_72] : memref<8x128xf32, #tpu.memory_space<vmem>>, vector<1x128xf32>
    %cst_73 = arith.constant dense<0.000000e+00> : vector<1x128xf32>
    %253 = tpu.matmul %248, %185, %cst_73 {dimension_numbers = #tpu.dot_dimension_numbers<[1], [0], [0], [1], [0, 0, 1, 1], [], []>} : vector<1x32xf32>, vector<32x128xf32>, vector<1x128xf32> -> vector<1x128xf32>
    %254 = arith.addf %252, %253 : vector<1x128xf32>
    %255 = arith.negf %254 : vector<1x128xf32>
    %256 = math.exp %255 : vector<1x128xf32>
    %cst_74 = arith.constant 1.000000e+00 : f32
    %257 = vector.broadcast %cst_74 : f32 to vector<1x128xf32>
    %258 = arith.addf %257, %256 : vector<1x128xf32>
    %259 = arith.divf %257, %258 : vector<1x128xf32>
    %260 = vector.extract_strided_slice %259 {offsets = [0, 0], sizes = [1, 32], strides = [1, 1]} : vector<1x128xf32> to vector<1x32xf32>
    %261 = vector.extract_strided_slice %259 {offsets = [0, 32], sizes = [1, 32], strides = [1, 1]} : vector<1x128xf32> to vector<1x32xf32>
    %262 = vector.extract_strided_slice %259 {offsets = [0, 96], sizes = [1, 32], strides = [1, 1]} : vector<1x128xf32> to vector<1x32xf32>
    %263 = vector.extract_strided_slice %254 {offsets = [0, 64], sizes = [1, 32], strides = [1, 1]} : vector<1x128xf32> to vector<1x32xf32>
    %264 = math.tanh %263 : vector<1x32xf32>
    %265 = arith.mulf %261, %246 : vector<1x32xf32>
    %266 = arith.mulf %260, %264 : vector<1x32xf32>
    %267 = arith.addf %265, %266 : vector<1x32xf32>
    %268 = math.tanh %267 : vector<1x32xf32>
    %269 = arith.mulf %262, %268 : vector<1x32xf32>
    %270 = arith.index_cast %c3_i32_71 : i32 to index
    %c0_75 = arith.constant 0 : index
    %271 = vector.load %arg10[%270, %c0_75] : memref<8x32xf32, #tpu.memory_space<vmem>>, vector<1x32xf32>
    tpu.vector_store %arg10[%270, %c0_75], %269 {strides = array<i32>} : memref<8x32xf32, #tpu.memory_space<vmem>>, vector<1x32xf32>,
    %c4_i32_76 = arith.constant 4 : i32
    %272 = arith.index_cast %c4_i32_76 : i32 to index
    %c0_77 = arith.constant 0 : index
    %273 = vector.load %arg13[%272, %c0_77] : memref<8x128xf32, #tpu.memory_space<vmem>>, vector<1x128xf32>
    %cst_78 = arith.constant dense<0.000000e+00> : vector<1x128xf32>
    %274 = tpu.matmul %269, %185, %cst_78 {dimension_numbers = #tpu.dot_dimension_numbers<[1], [0], [0], [1], [0, 0, 1, 1], [], []>} : vector<1x32xf32>, vector<32x128xf32>, vector<1x128xf32> -> vector<1x128xf32>
    %275 = arith.addf %273, %274 : vector<1x128xf32>
    %276 = arith.negf %275 : vector<1x128xf32>
    %277 = math.exp %276 : vector<1x128xf32>
    %cst_79 = arith.constant 1.000000e+00 : f32
    %278 = vector.broadcast %cst_79 : f32 to vector<1x128xf32>
    %279 = arith.addf %278, %277 : vector<1x128xf32>
    %280 = arith.divf %278, %279 : vector<1x128xf32>
    %281 = vector.extract_strided_slice %280 {offsets = [0, 0], sizes = [1, 32], strides = [1, 1]} : vector<1x128xf32> to vector<1x32xf32>
    %282 = vector.extract_strided_slice %280 {offsets = [0, 32], sizes = [1, 32], strides = [1, 1]} : vector<1x128xf32> to vector<1x32xf32>
    %283 = vector.extract_strided_slice %280 {offsets = [0, 96], sizes = [1, 32], strides = [1, 1]} : vector<1x128xf32> to vector<1x32xf32>
    %284 = vector.extract_strided_slice %275 {offsets = [0, 64], sizes = [1, 32], strides = [1, 1]} : vector<1x128xf32> to vector<1x32xf32>
    %285 = math.tanh %284 : vector<1x32xf32>
    %286 = arith.mulf %282, %267 : vector<1x32xf32>
    %287 = arith.mulf %281, %285 : vector<1x32xf32>
    %288 = arith.addf %286, %287 : vector<1x32xf32>
    %289 = math.tanh %288 : vector<1x32xf32>
    %290 = arith.mulf %283, %289 : vector<1x32xf32>
    %291 = arith.index_cast %c4_i32_76 : i32 to index
    %c0_80 = arith.constant 0 : index
    %292 = vector.load %arg10[%291, %c0_80] : memref<8x32xf32, #tpu.memory_space<vmem>>, vector<1x32xf32>
    tpu.vector_store %arg10[%291, %c0_80], %290 {strides = array<i32>} : memref<8x32xf32, #tpu.memory_space<vmem>>, vector<1x32xf32>,
    %c5_i32_81 = arith.constant 5 : i32
    %293 = arith.index_cast %c5_i32_81 : i32 to index
    %c0_82 = arith.constant 0 : index
    %294 = vector.load %arg13[%293, %c0_82] : memref<8x128xf32, #tpu.memory_space<vmem>>, vector<1x128xf32>
    %cst_83 = arith.constant dense<0.000000e+00> : vector<1x128xf32>
    %295 = tpu.matmul %290, %185, %cst_83 {dimension_numbers = #tpu.dot_dimension_numbers<[1], [0], [0], [1], [0, 0, 1, 1], [], []>} : vector<1x32xf32>, vector<32x128xf32>, vector<1x128xf32> -> vector<1x128xf32>
    %296 = arith.addf %294, %295 : vector<1x128xf32>
    %297 = arith.negf %296 : vector<1x128xf32>
    %298 = math.exp %297 : vector<1x128xf32>
    %cst_84 = arith.constant 1.000000e+00 : f32
    %299 = vector.broadcast %cst_84 : f32 to vector<1x128xf32>
    %300 = arith.addf %299, %298 : vector<1x128xf32>
    %301 = arith.divf %299, %300 : vector<1x128xf32>
    %302 = vector.extract_strided_slice %301 {offsets = [0, 0], sizes = [1, 32], strides = [1, 1]} : vector<1x128xf32> to vector<1x32xf32>
    %303 = vector.extract_strided_slice %301 {offsets = [0, 32], sizes = [1, 32], strides = [1, 1]} : vector<1x128xf32> to vector<1x32xf32>
    %304 = vector.extract_strided_slice %301 {offsets = [0, 96], sizes = [1, 32], strides = [1, 1]} : vector<1x128xf32> to vector<1x32xf32>
    %305 = vector.extract_strided_slice %296 {offsets = [0, 64], sizes = [1, 32], strides = [1, 1]} : vector<1x128xf32> to vector<1x32xf32>
    %306 = math.tanh %305 : vector<1x32xf32>
    %307 = arith.mulf %303, %288 : vector<1x32xf32>
    %308 = arith.mulf %302, %306 : vector<1x32xf32>
    %309 = arith.addf %307, %308 : vector<1x32xf32>
    %310 = math.tanh %309 : vector<1x32xf32>
    %311 = arith.mulf %304, %310 : vector<1x32xf32>
    %312 = arith.index_cast %c5_i32_81 : i32 to index
    %c0_85 = arith.constant 0 : index
    %313 = vector.load %arg10[%312, %c0_85] : memref<8x32xf32, #tpu.memory_space<vmem>>, vector<1x32xf32>
    tpu.vector_store %arg10[%312, %c0_85], %311 {strides = array<i32>} : memref<8x32xf32, #tpu.memory_space<vmem>>, vector<1x32xf32>,
    %c6_i32_86 = arith.constant 6 : i32
    %314 = arith.index_cast %c6_i32_86 : i32 to index
    %c0_87 = arith.constant 0 : index
    %315 = vector.load %arg13[%314, %c0_87] : memref<8x128xf32, #tpu.memory_space<vmem>>, vector<1x128xf32>
    %cst_88 = arith.constant dense<0.000000e+00> : vector<1x128xf32>
    %316 = tpu.matmul %311, %185, %cst_88 {dimension_numbers = #tpu.dot_dimension_numbers<[1], [0], [0], [1], [0, 0, 1, 1], [], []>} : vector<1x32xf32>, vector<32x128xf32>, vector<1x128xf32> -> vector<1x128xf32>
    %317 = arith.addf %315, %316 : vector<1x128xf32>
    %318 = arith.negf %317 : vector<1x128xf32>
    %319 = math.exp %318 : vector<1x128xf32>
    %cst_89 = arith.constant 1.000000e+00 : f32
    %320 = vector.broadcast %cst_89 : f32 to vector<1x128xf32>
    %321 = arith.addf %320, %319 : vector<1x128xf32>
    %322 = arith.divf %320, %321 : vector<1x128xf32>
    %323 = vector.extract_strided_slice %322 {offsets = [0, 0], sizes = [1, 32], strides = [1, 1]} : vector<1x128xf32> to vector<1x32xf32>
    %324 = vector.extract_strided_slice %322 {offsets = [0, 32], sizes = [1, 32], strides = [1, 1]} : vector<1x128xf32> to vector<1x32xf32>
    %325 = vector.extract_strided_slice %322 {offsets = [0, 96], sizes = [1, 32], strides = [1, 1]} : vector<1x128xf32> to vector<1x32xf32>
    %326 = vector.extract_strided_slice %317 {offsets = [0, 64], sizes = [1, 32], strides = [1, 1]} : vector<1x128xf32> to vector<1x32xf32>
    %327 = math.tanh %326 : vector<1x32xf32>
    %328 = arith.mulf %324, %309 : vector<1x32xf32>
    %329 = arith.mulf %323, %327 : vector<1x32xf32>
    %330 = arith.addf %328, %329 : vector<1x32xf32>
    %331 = math.tanh %330 : vector<1x32xf32>
    %332 = arith.mulf %325, %331 : vector<1x32xf32>
    %333 = arith.index_cast %c6_i32_86 : i32 to index
    %c0_90 = arith.constant 0 : index
    %334 = vector.load %arg10[%333, %c0_90] : memref<8x32xf32, #tpu.memory_space<vmem>>, vector<1x32xf32>
    tpu.vector_store %arg10[%333, %c0_90], %332 {strides = array<i32>} : memref<8x32xf32, #tpu.memory_space<vmem>>, vector<1x32xf32>,
    %c7_i32_91 = arith.constant 7 : i32
    %335 = arith.index_cast %c7_i32_91 : i32 to index
    %c0_92 = arith.constant 0 : index
    %336 = vector.load %arg13[%335, %c0_92] : memref<8x128xf32, #tpu.memory_space<vmem>>, vector<1x128xf32>
    %cst_93 = arith.constant dense<0.000000e+00> : vector<1x128xf32>
    %337 = tpu.matmul %332, %185, %cst_93 {dimension_numbers = #tpu.dot_dimension_numbers<[1], [0], [0], [1], [0, 0, 1, 1], [], []>} : vector<1x32xf32>, vector<32x128xf32>, vector<1x128xf32> -> vector<1x128xf32>
    %338 = arith.addf %336, %337 : vector<1x128xf32>
    %339 = arith.negf %338 : vector<1x128xf32>
    %340 = math.exp %339 : vector<1x128xf32>
    %cst_94 = arith.constant 1.000000e+00 : f32
    %341 = vector.broadcast %cst_94 : f32 to vector<1x128xf32>
    %342 = arith.addf %341, %340 : vector<1x128xf32>
    %343 = arith.divf %341, %342 : vector<1x128xf32>
    %344 = vector.extract_strided_slice %343 {offsets = [0, 0], sizes = [1, 32], strides = [1, 1]} : vector<1x128xf32> to vector<1x32xf32>
    %345 = vector.extract_strided_slice %343 {offsets = [0, 32], sizes = [1, 32], strides = [1, 1]} : vector<1x128xf32> to vector<1x32xf32>
    %346 = vector.extract_strided_slice %343 {offsets = [0, 96], sizes = [1, 32], strides = [1, 1]} : vector<1x128xf32> to vector<1x32xf32>
    %347 = vector.extract_strided_slice %338 {offsets = [0, 64], sizes = [1, 32], strides = [1, 1]} : vector<1x128xf32> to vector<1x32xf32>
    %348 = math.tanh %347 : vector<1x32xf32>
    %349 = arith.mulf %345, %330 : vector<1x32xf32>
    %350 = arith.mulf %344, %348 : vector<1x32xf32>
    %351 = arith.addf %349, %350 : vector<1x32xf32>
    %352 = math.tanh %351 : vector<1x32xf32>
    %353 = arith.mulf %346, %352 : vector<1x32xf32>
    %354 = arith.index_cast %c7_i32_91 : i32 to index
    %c0_95 = arith.constant 0 : index
    %355 = vector.load %arg10[%354, %c0_95] : memref<8x32xf32, #tpu.memory_space<vmem>>, vector<1x32xf32>
    tpu.vector_store %arg10[%354, %c0_95], %353 {strides = array<i32>} : memref<8x32xf32, #tpu.memory_space<vmem>>, vector<1x32xf32>,
    %c8_i32_96 = arith.constant 8 : i32
    %c0_97 = arith.constant 0 : index
    %c0_98 = arith.constant 0 : index
    %356 = vector.load %arg10[%c0_97, %c0_98] : memref<8x32xf32, #tpu.memory_space<vmem>>, vector<8x32xf32>
    %c0_99 = arith.constant 0 : index
    %c0_100 = arith.constant 0 : index
    %357 = vector.load %arg8[%c0_99, %c0_100] : memref<32x128xf32, #tpu.memory_space<vmem>>, vector<32x128xf32>
    %cst_101 = arith.constant dense<0.000000e+00> : vector<8x128xf32>
    %358 = tpu.matmul %356, %357, %cst_101 {dimension_numbers = #tpu.dot_dimension_numbers<[1], [0], [0], [1], [0, 0, 1, 1], [], []>} : vector<8x32xf32>, vector<32x128xf32>, vector<8x128xf32> -> vector<8x128xf32>
    %c0_102 = arith.constant 0 : index
    %c0_103 = arith.constant 0 : index
    %359 = vector.load %arg9[%c0_102, %c0_103] : memref<1x128xf32, #tpu.memory_space<vmem>>, vector<1x128xf32>
    %360 = vector.broadcast %359 : vector<1x128xf32> to vector<8x128xf32>
    %361 = arith.addf %358, %360 : vector<8x128xf32>
    %362 = arith.negf %361 : vector<8x128xf32>
    %363 = math.exp %362 : vector<8x128xf32>
    %cst_104 = arith.constant 1.000000e+00 : f32
    %364 = vector.broadcast %cst_104 : f32 to vector<8x128xf32>
    %365 = arith.addf %364, %363 : vector<8x128xf32>
    %366 = arith.divf %364, %365 : vector<8x128xf32>
    %c0_105 = arith.constant 0 : index
    %c0_106 = arith.constant 0 : index
    %367 = vector.load %arg11[%c0_105, %c0_106] : memref<8x128xf32, #tpu.memory_space<vmem>>, vector<8x128xf32>
    tpu.vector_store %arg11[%c0_105, %c0_106], %366 {strides = array<i32>} : memref<8x128xf32, #tpu.memory_space<vmem>>, vector<8x128xf32>,
    return
  }
  func.func @transform_0(%arg0: i32) -> (i32, i32) {
    %c0_i32 = arith.constant 0 : i32
    %c0_i32_0 = arith.constant 0 : i32
    %c0_i32_1 = arith.constant 0 : i32
    return %c0_i32, %c0_i32_0 : i32, i32
  }
  func.func @transform_1(%arg0: i32) -> (i32, i32) {
    %c0_i32 = arith.constant 0 : i32
    %c0_i32_0 = arith.constant 0 : i32
    %c0_i32_1 = arith.constant 0 : i32
    return %c0_i32, %c0_i32_0 : i32, i32
  }
  func.func @transform_2(%arg0: i32) -> (i32, i32) {
    %c0_i32 = arith.constant 0 : i32
    %c0_i32_0 = arith.constant 0 : i32
    %c0_i32_1 = arith.constant 0 : i32
    return %c0_i32, %c0_i32_0 : i32, i32
  }
  func.func @transform_3(%arg0: i32) -> (i32, i32) {
    %c0_i32 = arith.constant 0 : i32
    %c0_i32_0 = arith.constant 0 : i32
    %c0_i32_1 = arith.constant 0 : i32
    return %c0_i32, %c0_i32_0 : i32, i32
  }
  func.func @transform_4(%arg0: i32) -> (i32, i32) {
    %c0_i32 = arith.constant 0 : i32
    %c0_i32_0 = arith.constant 0 : i32
    %c0_i32_1 = arith.constant 0 : i32
    return %c0_i32, %c0_i32_0 : i32, i32
  }
  func.func @transform_5(%arg0: i32) -> (i32, i32) {
    %c0_i32 = arith.constant 0 : i32
    %c0_i32_0 = arith.constant 0 : i32
    %c0_i32_1 = arith.constant 0 : i32
    return %c0_i32, %c0_i32_0 : i32, i32
  }
  func.func @transform_6(%arg0: i32) -> (i32, i32) {
    %c0_i32 = arith.constant 0 : i32
    %c0_i32_0 = arith.constant 0 : i32
    %c0_i32_1 = arith.constant 0 : i32
    return %c0_i32, %c0_i32_0 : i32, i32
  }
  func.func @transform_7(%arg0: i32) -> (i32, i32) {
    %c0_i32 = arith.constant 0 : i32
    %c0_i32_0 = arith.constant 0 : i32
    %c0_i32_1 = arith.constant 0 : i32
    return %c0_i32, %c0_i32_0 : i32, i32
  }
  func.func @transform_8(%arg0: i32) -> (i32, i32) {
    %c0_i32 = arith.constant 0 : i32
    %c0_i32_0 = arith.constant 0 : i32
    %c0_i32_1 = arith.constant 0 : i32
    return %c0_i32, %c0_i32_0 : i32, i32
  }
  func.func @transform_9(%arg0: i32) -> (i32, i32) {
    %c0_i32 = arith.constant 0 : i32
    %c0_i32_0 = arith.constant 0 : i32
    %c0_i32_1 = arith.constant 0 : i32
    return %c0_i32, %c0_i32_0 : i32, i32
  }
  func.func @transform_10(%arg0: i32) -> (i32, i32) {
    %c0_i32 = arith.constant 0 : i32
    %c0_i32_0 = arith.constant 0 : i32
    %c0_i32_1 = arith.constant 0 : i32
    return %c0_i32, %c0_i32_0 : i32, i32
  }
}

</mosaic_0001>

<bundles_post_ra>
// kernel: tpu_custom_call.1
= control target key start
LH: loop header
LB: loop body
LE: loop exit
PB: predicated region body
PF: predicated region fallthrough
CT: control target
= control target key end

     0   :  { %16 = vsyncpa [#allocation5], 0  ;;  %s1946_s0 = inlined_call_operand.hbm [shape: f32[8,16], index: 0, kind: input, shape index: {}]   ;;  %s1947_s1 = inlined_call_operand.hbm [shape: f32[16,128], index: 1, kind: input, shape index: {}]   ;;  %s1948_s2 = inlined_call_operand.hbm [shape: f32[32,128], index: 2, kind: input, shape index: {}]   ;;  %s1949_s3 = inlined_call_operand.vmem [shape: f32[1,128], index: 3, kind: input, shape index: {}]   ;;  %s1950_s4 = inlined_call_operand.hbm [shape: f32[32,128], index: 4, kind: input, shape index: {}]   ;;  %s1951_s5 = inlined_call_operand.hbm [shape: f32[32,128], index: 5, kind: input, shape index: {}]   ;;  %s1952_s6 = inlined_call_operand.vmem [shape: f32[1,128], index: 6, kind: input, shape index: {}]   ;;  %s1953_s7 = inlined_call_operand.hbm [shape: f32[32,128], index: 7, kind: input, shape index: {}]   ;;  %s1954_s8 = inlined_call_operand.vmem [shape: f32[1,128], index: 8, kind: input, shape index: {}]   ;;  %s1955_s9 = inlined_call_operand.hbm [shape: f32[8,32], index: 9, kind: output, shape index: {0}]   ;;  %s1956_s10 = inlined_call_operand.hbm [shape: f32[8,128], index: 10, kind: output, shape index: {1}]  }
   0x1   :  { %17 = vsyncpa [#allocation8], 0 }
   0x2   :  { %18 = vsyncpa [#allocation11], 0 }
   0x3   :  { %19 = vsyncpa [#allocation14], 0 }
   0x4   :  { %20 = vsyncpa [#allocation6], 0  ;;  %s37_s15 = sshll.u32 %s1947_s1, 4  ;;  %s38_s15 = int_to_ptr.hbm [resolvable:$true] %s37_s15 }
   0x5   :  { %21 = vsyncpa [#allocation17], 0  ;;  %s1732_s16 = smov [#allocation7]   ;;  %s65_s20 = sshll.u32 %s1950_s4, 4  ;;  %s66_s20 = int_to_ptr.hbm [resolvable:$true] %s65_s20 }
   0x6   :  { %s39_s17 = sshll.u32 %s1732_s16, 4  ;;  %s1733_s21 = smov 128   ;;  %s40_s17 = int_to_ptr.vmem [resolvable:$true] %s39_s17 }
   0x7   :  { %s1734_s22 = smov 8   ;;  %s1735_s23 = smov [#allocation10]  }
   0x8   :  { %45 = dma.hbm_to_vmem [thread:$0]  %s38_s15, 256, %s40_s17, [#allocation8], %s1733_s21, %s1733_s21, %s1734_s22  }
   0x9   :  { %s67_s24 = sshll.u32 %s1735_s23, 4  ;;  %s27_s26 = sshll.u32 %s1946_s0, 4  ;;  %s68_s24 = int_to_ptr.vmem [resolvable:$true] %s67_s24  ;;  %s28_s26 = int_to_ptr.hbm [resolvable:$true] %s27_s26 }
   0xa   :  { %73 = dma.hbm_to_vmem [thread:$0]  %s66_s20, 512, %s68_s24, [#allocation11], %s1733_s21, %s1733_s21, %s1734_s22  }
   0xb   :  { %s50_s28 = sshll.u32 %s1948_s2, 4  ;;  %s1736_s29 = smov [#allocation4]   ;;  %s51_s28 = int_to_ptr.hbm [resolvable:$true] %s50_s28 }
   0xc   :  { %s29_s30 = sshll.u32 %s1736_s29, 4  ;;  %s1737_s11 = smov [#allocation9]   ;;  %s30_s30 = int_to_ptr.vmem [resolvable:$true] %s29_s30 }
   0xd   :  { %32 = dma.hbm_to_vmem [thread:$0]  %s28_s26, 128, %s30_s30, [#allocation5]  }
   0xe   :  { %s52_s12 = sshll.u32 %s1737_s11, 4  ;;  %s78_s0 = sshll.u32 %s1951_s5, 4  ;;  %s53_s12 = int_to_ptr.vmem [resolvable:$true] %s52_s12  ;;  %s79_s0 = int_to_ptr.hbm [resolvable:$true] %s78_s0 }
   0xf   :  { %58 = dma.hbm_to_vmem [thread:$0]  %s51_s28, 512, %s53_s12, [#allocation8], %s1733_s21, %s1733_s21, %s1734_s22  }
  0x10   :  { %s93_s2 = sshll.u32 %s1953_s7, 4  ;;  %s1738_s17 = smov [#allocation12]   ;;  %s94_s2 = int_to_ptr.hbm [resolvable:$true] %s93_s2 }
  0x11   :  { %s80_s18 = sshll.u32 %s1738_s17, 4  ;;  %s1739_s19 = smov [#allocation13]   ;;  %s81_s18 = int_to_ptr.vmem [resolvable:$true] %s80_s18 }
  0x12   :  { %86 = dma.hbm_to_vmem [thread:$0]  %s79_s0, 512, %s81_s18, [#allocation11], %s1733_s21, %s1733_s21, %s1734_s22  }
  0x13   :  { %s95_s5 = sshll.u32 %s1739_s19, 4  ;;  %s96_s5 = int_to_ptr.vmem [resolvable:$true] %s95_s5 }
  0x14   :  { %101 = dma.hbm_to_vmem [thread:$0]  %s94_s2, 512, %s96_s5, [#allocation14], %s1733_s21, %s1733_s21, %s1734_s22  }
  0x15   :  { %1720 = dma.done.wait [#allocation5], 128  }
  0x16   :  { %1721 = vsyncadd [#allocation5], 4294967168 }
  0x17   :  { %1722 = dma.done.wait [#allocation8], 768  }
  0x18   :  { %1723 = vsyncadd [#allocation8], 4294966528 }
  0x19   :  { %1724 = dma.done.wait [#allocation11], 1024  }
  0x1a   :  { %1725 = vsyncadd [#allocation11], 4294966272 }
  0x1b   :  { %1726 = dma.done.wait [#allocation14], 512  }
  0x1c   :  { %1727 = vsyncadd [#allocation14], 4294966784  ;;  %v130_v0 = vld [vmem:[#allocation7 + $0x8] sm:$0xff]  ;;  %v129_v1 = vld [vmem:[#allocation7] sm:$0xff]  ;;  %vm135_vm0 = vcmask 130048   ;;  %v1740_v7 = vmov 0.0  }
  0x1d   :  { %153 = vmatpush.msra.mxu0 %v130_v0  ;;  %v128_v2 = vld [vmem:[#allocation4] sm:$0xff]  ;;  %v163_v3 = vld [vmem:[#allocation9 + $0x18] sm:$0xff]  ;;  %v162_v4 = vld [vmem:[#allocation9 + $0x10] sm:$0xff]  ;;  %s1741_s21 = smov 64   ;;  %vm231_vm5 = vcmask 253952   ;;  %vm165_vm6 = vcmask 261120  }
  0x1e   :  { %181 = vmatpush.msra.mxu1 %v163_v3  ;;  %248 = vmatpush.msra.mxu2 %v163_v3  ;;  %v161_v5 = vld [vmem:[#allocation9 + $0x8] sm:$0xff]  ;;  %v160_v6 = vld [vmem:[#allocation9] sm:$0xff]  ;;  %v1393_v8 = vld [vmem:[%s1949_s3] ss:$0 sm:$0xff]  ;;  %s1742_s3 = smov 32   ;;  %s1317_s25 = sshll.u32 %s1955_s9, 4  ;;  %s1318_s25 = int_to_ptr.hbm [resolvable:$true] %s1317_s25 }
  0x1f   :  { %154 = vmatpush.msra.mxu0 %v129_v1  ;;  %314 = vmatpush.msra.mxu3 %v163_v3  ;;  %s1743_s1 = smov [#allocation15]   ;;  %s1744_s9 = smov [#allocation16]  }
  0x20   :  { %1346 = vmatmul.msk.f32.vlgmr.msra.gmra.mxu0 %vm135_vm0, %v128_v2  ;;  %182 = vmatpush.msra.mxu1 %v162_v4  ;;  %s1315_s26 = sshll.u32 %s1743_s1, 4  ;;  %s1326_s28 = sshll.u32 %s1744_s9, 4  ;;  %s1316_s26 = int_to_ptr.vmem [resolvable:$true] %s1315_s26  ;;  %s1327_s28 = int_to_ptr.vmem [resolvable:$true] %s1326_s28 }
  0x21   :  { %249 = vmatpush.msra.mxu2 %v162_v4  ;;  %315 = vmatpush.msra.mxu3 %v162_v4 }
  0x22   :  { %183 = vmatpush.msra.mxu1 %v161_v5  ;;  %380 = vmatpush.msrb.mxu0 %v163_v3 }
  0x23   :  { %250 = vmatpush.msra.mxu2 %v161_v5  ;;  %316 = vmatpush.msra.mxu3 %v161_v5 }
  0x24   :  { %184 = vmatpush.msra.mxu1 %v160_v6  ;;  %381 = vmatpush.msrb.mxu0 %v162_v4 }
  0x25   :  { %185 = vmatmul.f32.vlgmr.msra.gmra.mxu1 %v1740_v7  ;;  %251 = vmatpush.msra.mxu2 %v160_v6 }
  0x26   :  { %317 = vmatpush.msra.mxu3 %v160_v6  ;;  %382 = vmatpush.msrb.mxu0 %v161_v5 }
  0x27   :  { %446 = vmatpush.msrb.mxu1 %v163_v3  ;;  %512 = vmatpush.msrb.mxu2 %v163_v3 }
  0x28   :  { %383 = vmatpush.msrb.mxu0 %v160_v6  ;;  %578 = vmatpush.msrb.mxu3 %v163_v3 }
  0x29   :  { %447 = vmatpush.msrb.mxu1 %v162_v4  ;;  %513 = vmatpush.msrb.mxu2 %v162_v4 }
  0x2a   :  { %579 = vmatpush.msrb.mxu3 %v162_v4  ;;  %644 = vmatpush.msra.mxu0 %v163_v3 }
  0x2b   :  { %448 = vmatpush.msrb.mxu1 %v161_v5  ;;  %514 = vmatpush.msrb.mxu2 %v161_v5 }
  0x2c   :  { %580 = vmatpush.msrb.mxu3 %v161_v5  ;;  %645 = vmatpush.msra.mxu0 %v162_v4 }
  0x2d   :  { %449 = vmatpush.msrb.mxu1 %v160_v6  ;;  %515 = vmatpush.msrb.mxu2 %v160_v6 }
  0x2e   :  { %581 = vmatpush.msrb.mxu3 %v160_v6  ;;  %646 = vmatpush.msra.mxu0 %v161_v5 }
  0x30   :  { %647 = vmatpush.msra.mxu0 %v160_v6 }
  0x9d   :  { %v156_v9 = vpop.f32.mrf.mxu0 }
  0x9e   :  { %v157_v10 = vadd.f32 %v1393_v8, %v156_v9 }
  0xa0   :  { %159 = vst [vmem:[#allocation3] sm:$0xff] %v157_v10 }
  0xa2   :  { %v186_v11 = vpop.f32.mrf.mxu1 }
  0xa7   :  { %v164_v12 = vld [vmem:[#allocation3] sm:$0x1]  ;;  %v233_v37 = vld [vmem:[#allocation3 + $0x1] sm:$0x1]  ;;  %v299_v63 = vld [vmem:[#allocation3 + $0x2] sm:$0x1] }
  0xa8   :  { %v189_v13 = vadd.f32 %v186_v11, %v164_v12 }
  0xaa   :  { %1396 = vtanh.f32 %v189_v13  ;;  %v1347_v15 = vmul.f32 -1.442695, %v189_v13 }
  0xac   :  { %1398 = vpow2.f32 %v1347_v15 }
  0xb0   :  { %v1397_v14 = vpop.eup %1396 }
  0xb1   :  { %212 = vrot.lane.b32.xlu0 %v1397_v14, %s1741_s21 }
  0xb2   :  { %v1399_v16 = vpop.eup %1398 }
  0xb3   :  { %v193_v17 = vadd.f32 1.0, %v1399_v16 }
  0xb5   :  { %1400 = vrcp.f32 %v193_v17  ;;  %v205_v23 = vand.u32 2147483648, %v193_v17  ;;  %vm199_vm2 = vweird.f32 %v193_v17  ;;  %v203_v24 = vand.u32 2147483647, %v193_v17 }
  0xb7   :  { %v206_v26 = vor.u32 1.1754944e-38, %v205_v23  ;;  %vm204_vm4 = vcmp.eq.f32.partialorder %v203_v24, 8.507059e+37 }
  0xbb   :  { %v1401_v18 = vpop.eup %1400 }
  0xbc   :  { %v195_v19 = vmul.f32 %v1401_v18, %v193_v17  ;;  %vm200_vm1 = vweird.f32 %v1401_v18 }
  0xbd   :  { %vm201_vm3 = vmor %vm199_vm2, %vm200_vm1 }
  0xbe   :  { %v196_v20 = vsub.f32 1.0, %v195_v19 }
  0xc0   :  { %v197_v21 = vmul.f32 %v1401_v18, %v196_v20 }
  0xc2   :  { %v198_v22 = vadd.f32 %v1401_v18, %v197_v21 }
  0xc4   :  { %v202_v25 = vsel %vm201_vm3, %v1401_v18, %v198_v22 }
  0xc5   :  { %v207_v28 = vsel %vm204_vm4, %v206_v26, %v202_v25  ;;  %v365_v26 = vld [vmem:[#allocation3 + $0x3] sm:$0x1] }
  0xc6   :  { %v210_v30 = vmul.f32 0.0, %v207_v28 }
 0x123   :  { %v213_v27 = vpop.permute.xlu0 %212 }
 0x124   :  { %v215_v29 = vmul.f32 %v213_v27, %v207_v28 }
 0x126   :  { %217 = vrot.lane.b32.xlu0 %v215_v29, %s1742_s3 }
 0x198   :  { %v218_v31 = vpop.permute.xlu0 %217 }
 0x199   :  { %v220_v32 = vadd.f32 %v218_v31, %v210_v30 }
 0x19b   :  { %1402 = vtanh.f32 %v220_v32 }
 0x1a1   :  { %v1403_v33 = vpop.eup %1402 }
 0x1a2   :  { %223 = vrot.lane.b32.xlu1 %v1403_v33, %s1741_s21 }
 0x214   :  { %v224_v34 = vpop.permute.xlu1 %223 }
 0x215   :  { %v226_v35 = vmul.f32 %v224_v34, %v207_v28 }
 0x217   :  { %228 = vrot.lane.b32.xlu1 %v226_v35, %s1742_s3 }
 0x289   :  { %v229_v36 = vpop.permute.xlu1 %228 }
 0x28a   :  { %232 = vst.msk [vmem:[#allocation2] sm:$0x1] %vm231_vm5, %v229_v36  ;;  %1348 = vmatmul.msk.f32.vlgmr.msra.gmra.mxu2 %vm165_vm6, %v229_v36 }
 0x30d   :  { %v253_v38 = vpop.f32.mrf.mxu2 }
 0x30e   :  { %v256_v39 = vadd.f32 %v253_v38, %v233_v37 }
 0x310   :  { %1404 = vtanh.f32 %v256_v39  ;;  %v1349_v41 = vmul.f32 -1.442695, %v256_v39 }
 0x312   :  { %1406 = vpow2.f32 %v1349_v41 }
 0x316   :  { %v1405_v40 = vpop.eup %1404 }
 0x317   :  { %279 = vrot.lane.b32.xlu2 %v1405_v40, %s1741_s21 }
 0x318   :  { %v1407_v42 = vpop.eup %1406 }
 0x319   :  { %v260_v43 = vadd.f32 1.0, %v1407_v42 }
 0x31b   :  { %1408 = vrcp.f32 %v260_v43  ;;  %v272_v49 = vand.u32 2147483648, %v260_v43  ;;  %vm266_vm8 = vweird.f32 %v260_v43  ;;  %v270_v50 = vand.u32 2147483647, %v260_v43 }
 0x31d   :  { %v273_v52 = vor.u32 1.1754944e-38, %v272_v49  ;;  %vm271_vm10 = vcmp.eq.f32.partialorder %v270_v50, 8.507059e+37 }
 0x321   :  { %v1409_v44 = vpop.eup %1408 }
 0x322   :  { %v262_v45 = vmul.f32 %v1409_v44, %v260_v43  ;;  %vm267_vm7 = vweird.f32 %v1409_v44 }
 0x323   :  { %vm268_vm9 = vmor %vm266_vm8, %vm267_vm7 }
 0x324   :  { %v263_v46 = vsub.f32 1.0, %v262_v45 }
 0x326   :  { %v264_v47 = vmul.f32 %v1409_v44, %v263_v46 }
 0x328   :  { %v265_v48 = vadd.f32 %v1409_v44, %v264_v47 }
 0x32a   :  { %v269_v51 = vsel %vm268_vm9, %v1409_v44, %v265_v48 }
 0x32b   :  { %v274_v54 = vsel %vm271_vm10, %v273_v52, %v269_v51  ;;  %v431_v52 = vld [vmem:[#allocation3 + $0x4] sm:$0x1] }
 0x32c   :  { %v277_v56 = vmul.f32 %v274_v54, %v220_v32 }
 0x371   :  { %v280_v53 = vpop.permute.xlu2 %279 }
 0x372   :  { %v282_v55 = vmul.f32 %v280_v53, %v274_v54 }
 0x374   :  { %284 = vrot.lane.b32.xlu2 %v282_v55, %s1742_s3 }
 0x3ce   :  { %v285_v57 = vpop.permute.xlu2 %284 }
 0x3cf   :  { %v287_v58 = vadd.f32 %v285_v57, %v277_v56 }
 0x3d1   :  { %1410 = vtanh.f32 %v287_v58 }
 0x3d7   :  { %v1411_v59 = vpop.eup %1410 }
 0x3d8   :  { %290 = vrot.lane.b32.xlu0 %v1411_v59, %s1741_s21 }
 0x44a   :  { %v291_v60 = vpop.permute.xlu0 %290 }
 0x44b   :  { %v293_v61 = vmul.f32 %v291_v60, %v274_v54 }
 0x44d   :  { %295 = vrot.lane.b32.xlu1 %v293_v61, %s1742_s3 }
 0x4bf   :  { %v296_v62 = vpop.permute.xlu1 %295 }
 0x4c0   :  { %298 = vst.msk [vmem:[#allocation2 + $0x1] sm:$0x1] %vm231_vm5, %v296_v62  ;;  %1350 = vmatmul.msk.f32.vlgmr.msra.gmra.mxu3 %vm165_vm6, %v296_v62 }
 0x543   :  { %v319_v0 = vpop.f32.mrf.mxu3 }
 0x544   :  { %v322_v1 = vadd.f32 %v319_v0, %v299_v63 }
 0x546   :  { %1412 = vtanh.f32 %v322_v1  ;;  %v1351_v3 = vmul.f32 -1.442695, %v322_v1 }
 0x548   :  { %1414 = vpow2.f32 %v1351_v3 }
 0x54c   :  { %v1413_v2 = vpop.eup %1412 }
 0x54d   :  { %345 = vrot.lane.b32.xlu2 %v1413_v2, %s1741_s21 }
 0x54e   :  { %v1415_v4 = vpop.eup %1414 }
 0x54f   :  { %v326_v5 = vadd.f32 1.0, %v1415_v4 }
 0x551   :  { %1416 = vrcp.f32 %v326_v5  ;;  %v338_v12 = vand.u32 2147483648, %v326_v5  ;;  %vm332_vm12 = vweird.f32 %v326_v5  ;;  %v336_v13 = vand.u32 2147483647, %v326_v5 }
 0x553   :  { %v339_v15 = vor.u32 1.1754944e-38, %v338_v12  ;;  %vm337_vm14 = vcmp.eq.f32.partialorder %v336_v13, 8.507059e+37 }
 0x557   :  { %v1417_v6 = vpop.eup %1416 }
 0x558   :  { %v328_v8 = vmul.f32 %v1417_v6, %v326_v5  ;;  %vm333_vm11 = vweird.f32 %v1417_v6 }
 0x559   :  { %vm334_vm13 = vmor %vm332_vm12, %vm333_vm11 }
 0x55a   :  { %v329_v9 = vsub.f32 1.0, %v328_v8 }
 0x55c   :  { %v330_v10 = vmul.f32 %v1417_v6, %v329_v9 }
 0x55e   :  { %v331_v11 = vadd.f32 %v1417_v6, %v330_v10 }
 0x560   :  { %v335_v14 = vsel %vm334_vm13, %v1417_v6, %v331_v11 }
 0x561   :  { %v340_v17 = vsel %vm337_vm14, %v339_v15, %v335_v14  ;;  %v497_v15 = vld [vmem:[#allocation3 + $0x5] sm:$0x1] }
 0x562   :  { %v343_v19 = vmul.f32 %v340_v17, %v287_v58 }
 0x5a7   :  { %v346_v16 = vpop.permute.xlu2 %345 }
 0x5a8   :  { %v348_v18 = vmul.f32 %v346_v16, %v340_v17 }
 0x5aa   :  { %350 = vrot.lane.b32.xlu0 %v348_v18, %s1742_s3 }
 0x61c   :  { %v351_v20 = vpop.permute.xlu0 %350 }
 0x61d   :  { %v353_v21 = vadd.f32 %v351_v20, %v343_v19 }
 0x61f   :  { %1418 = vtanh.f32 %v353_v21 }
 0x625   :  { %v1419_v22 = vpop.eup %1418 }
 0x626   :  { %356 = vrot.lane.b32.xlu1 %v1419_v22, %s1741_s21 }
 0x698   :  { %v357_v23 = vpop.permute.xlu1 %356 }
 0x699   :  { %v359_v24 = vmul.f32 %v357_v23, %v340_v17 }
 0x69b   :  { %361 = vrot.lane.b32.xlu2 %v359_v24, %s1742_s3 }
 0x6f5   :  { %v362_v25 = vpop.permute.xlu2 %361 }
 0x6f6   :  { %364 = vst.msk [vmem:[#allocation2 + $0x2] sm:$0x1] %vm231_vm5, %v362_v25  ;;  %1352 = vmatmul.msk.f32.vlgmr.msrb.gmra.mxu0 %vm165_vm6, %v362_v25 }
 0x773   :  { %v385_v27 = vpop.f32.mrf.mxu0 }
 0x774   :  { %v388_v28 = vadd.f32 %v385_v27, %v365_v26 }
 0x776   :  { %1420 = vtanh.f32 %v388_v28  ;;  %v1353_v30 = vmul.f32 -1.442695, %v388_v28 }
 0x778   :  { %1422 = vpow2.f32 %v1353_v30 }
 0x77c   :  { %v1421_v29 = vpop.eup %1420 }
 0x77d   :  { %411 = vrot.lane.b32.xlu0 %v1421_v29, %s1741_s21 }
 0x77e   :  { %v1423_v31 = vpop.eup %1422 }
 0x77f   :  { %v392_v32 = vadd.f32 1.0, %v1423_v31 }
 0x781   :  { %1424 = vrcp.f32 %v392_v32  ;;  %v404_v38 = vand.u32 2147483648, %v392_v32  ;;  %vm398_vm0 = vweird.f32 %v392_v32  ;;  %v402_v39 = vand.u32 2147483647, %v392_v32 }
 0x783   :  { %v405_v41 = vor.u32 1.1754944e-38, %v404_v38  ;;  %vm403_vm2 = vcmp.eq.f32.partialorder %v402_v39, 8.507059e+37 }
 0x787   :  { %v1425_v33 = vpop.eup %1424 }
 0x788   :  { %v394_v34 = vmul.f32 %v1425_v33, %v392_v32  ;;  %vm399_vm15 = vweird.f32 %v1425_v33 }
 0x789   :  { %vm400_vm1 = vmor %vm398_vm0, %vm399_vm15 }
 0x78a   :  { %v395_v35 = vsub.f32 1.0, %v394_v34 }
 0x78c   :  { %v396_v36 = vmul.f32 %v1425_v33, %v395_v35 }
 0x78e   :  { %v397_v37 = vadd.f32 %v1425_v33, %v396_v36 }
 0x790   :  { %v401_v40 = vsel %vm400_vm1, %v1425_v33, %v397_v37 }
 0x791   :  { %v406_v43 = vsel %vm403_vm2, %v405_v41, %v401_v40  ;;  %v563_v41 = vld [vmem:[#allocation3 + $0x6] sm:$0x1] }
 0x792   :  { %v409_v45 = vmul.f32 %v406_v43, %v353_v21 }
 0x7ef   :  { %v412_v42 = vpop.permute.xlu0 %411 }
 0x7f0   :  { %v414_v44 = vmul.f32 %v412_v42, %v406_v43 }
 0x7f2   :  { %416 = vrot.lane.b32.xlu1 %v414_v44, %s1742_s3 }
 0x864   :  { %v417_v46 = vpop.permute.xlu1 %416 }
 0x865   :  { %v419_v47 = vadd.f32 %v417_v46, %v409_v45 }
 0x867   :  { %1426 = vtanh.f32 %v419_v47 }
 0x86d   :  { %v1427_v48 = vpop.eup %1426 }
 0x86e   :  { %422 = vrot.lane.b32.xlu2 %v1427_v48, %s1741_s21 }
 0x8c8   :  { %v423_v49 = vpop.permute.xlu2 %422 }
 0x8c9   :  { %v425_v50 = vmul.f32 %v423_v49, %v406_v43 }
 0x8cb   :  { %427 = vrot.lane.b32.xlu0 %v425_v50, %s1742_s3 }
 0x93d   :  { %v428_v51 = vpop.permute.xlu0 %427 }
 0x93e   :  { %430 = vst.msk [vmem:[#allocation2 + $0x3] sm:$0x1] %vm231_vm5, %v428_v51  ;;  %1354 = vmatmul.msk.f32.vlgmr.msrb.gmra.mxu1 %vm165_vm6, %v428_v51 }
 0x9bb   :  { %v451_v53 = vpop.f32.mrf.mxu1 }
 0x9bc   :  { %v454_v54 = vadd.f32 %v451_v53, %v431_v52 }
 0x9be   :  { %1428 = vtanh.f32 %v454_v54  ;;  %v1355_v56 = vmul.f32 -1.442695, %v454_v54 }
 0x9c0   :  { %1430 = vpow2.f32 %v1355_v56 }
 0x9c4   :  { %v1429_v55 = vpop.eup %1428 }
 0x9c5   :  { %477 = vrot.lane.b32.xlu1 %v1429_v55, %s1741_s21 }
 0x9c6   :  { %v1431_v57 = vpop.eup %1430 }
 0x9c7   :  { %v458_v58 = vadd.f32 1.0, %v1431_v57 }
 0x9c9   :  { %1432 = vrcp.f32 %v458_v58  ;;  %v470_v0 = vand.u32 2147483648, %v458_v58  ;;  %vm464_vm4 = vweird.f32 %v458_v58  ;;  %v468_v1 = vand.u32 2147483647, %v458_v58 }
 0x9cb   :  { %v471_v3 = vor.u32 1.1754944e-38, %v470_v0  ;;  %vm469_vm8 = vcmp.eq.f32.partialorder %v468_v1, 8.507059e+37 }
 0x9cf   :  { %v1433_v59 = vpop.eup %1432 }
 0x9d0   :  { %v460_v60 = vmul.f32 %v1433_v59, %v458_v58  ;;  %vm465_vm3 = vweird.f32 %v1433_v59 }
 0x9d1   :  { %vm466_vm7 = vmor %vm464_vm4, %vm465_vm3 }
 0x9d2   :  { %v461_v61 = vsub.f32 1.0, %v460_v60 }
 0x9d4   :  { %v462_v62 = vmul.f32 %v1433_v59, %v461_v61 }
 0x9d6   :  { %v463_v63 = vadd.f32 %v1433_v59, %v462_v62 }
 0x9d8   :  { %v467_v2 = vsel %vm466_vm7, %v1433_v59, %v463_v63 }
 0x9d9   :  { %v472_v5 = vsel %vm469_vm8, %v471_v3, %v467_v2  ;;  %v629_v3 = vld [vmem:[#allocation3 + $0x7] sm:$0x1] }
 0x9da   :  { %v475_v8 = vmul.f32 %v472_v5, %v419_v47 }
 0xa37   :  { %v478_v4 = vpop.permute.xlu1 %477 }
 0xa38   :  { %v480_v6 = vmul.f32 %v478_v4, %v472_v5 }
 0xa3a   :  { %482 = vrot.lane.b32.xlu2 %v480_v6, %s1742_s3 }
 0xa94   :  { %v483_v9 = vpop.permute.xlu2 %482 }
 0xa95   :  { %v485_v10 = vadd.f32 %v483_v9, %v475_v8 }
 0xa97   :  { %1434 = vtanh.f32 %v485_v10 }
 0xa9d   :  { %v1435_v11 = vpop.eup %1434 }
 0xa9e   :  { %488 = vrot.lane.b32.xlu0 %v1435_v11, %s1741_s21 }
 0xb10   :  { %v489_v12 = vpop.permute.xlu0 %488 }
 0xb11   :  { %v491_v13 = vmul.f32 %v489_v12, %v472_v5 }
 0xb13   :  { %493 = vrot.lane.b32.xlu1 %v491_v13, %s1742_s3 }
 0xb85   :  { %v494_v14 = vpop.permute.xlu1 %493 }
 0xb86   :  { %496 = vst.msk [vmem:[#allocation2 + $0x4] sm:$0x1] %vm231_vm5, %v494_v14  ;;  %1356 = vmatmul.msk.f32.vlgmr.msrb.gmra.mxu2 %vm165_vm6, %v494_v14 }
 0xc09   :  { %v517_v16 = vpop.f32.mrf.mxu2 }
 0xc0a   :  { %v520_v17 = vadd.f32 %v517_v16, %v497_v15 }
 0xc0c   :  { %1436 = vtanh.f32 %v520_v17  ;;  %v1357_v19 = vmul.f32 -1.442695, %v520_v17 }
 0xc0e   :  { %1438 = vpow2.f32 %v1357_v19 }
 0xc12   :  { %v1437_v18 = vpop.eup %1436 }
 0xc13   :  { %543 = vrot.lane.b32.xlu2 %v1437_v18, %s1741_s21 }
 0xc14   :  { %v1439_v20 = vpop.eup %1438 }
 0xc15   :  { %v524_v21 = vadd.f32 1.0, %v1439_v20 }
 0xc17   :  { %1440 = vrcp.f32 %v524_v21  ;;  %v536_v27 = vand.u32 2147483648, %v524_v21  ;;  %vm530_vm10 = vweird.f32 %v524_v21  ;;  %v534_v28 = vand.u32 2147483647, %v524_v21 }
 0xc19   :  { %v537_v30 = vor.u32 1.1754944e-38, %v536_v27  ;;  %vm535_vm12 = vcmp.eq.f32.partialorder %v534_v28, 8.507059e+37 }
 0xc1d   :  { %v1441_v22 = vpop.eup %1440 }
 0xc1e   :  { %v526_v23 = vmul.f32 %v1441_v22, %v524_v21  ;;  %vm531_vm9 = vweird.f32 %v1441_v22 }
 0xc1f   :  { %vm532_vm11 = vmor %vm530_vm10, %vm531_vm9 }
 0xc20   :  { %v527_v24 = vsub.f32 1.0, %v526_v23 }
 0xc22   :  { %v528_v25 = vmul.f32 %v1441_v22, %v527_v24 }
 0xc24   :  { %v529_v26 = vadd.f32 %v1441_v22, %v528_v25 }
 0xc26   :  { %v533_v29 = vsel %vm532_vm11, %v1441_v22, %v529_v26 }
 0xc27   :  { %v538_v32 = vsel %vm535_vm12, %v537_v30, %v533_v29  ;;  %v699_v29 = vld [vmem:[#allocation10 + $0x18] sm:$0xff]  ;;  %v698_v30 = vld [vmem:[#allocation10 + $0x10] sm:$0xff] }
 0xc28   :  { %v541_v34 = vmul.f32 %v538_v32, %v485_v10  ;;  %719 = vmatpush.msra.mxu1 %v699_v29 }
 0xc2a   :  { %720 = vmatpush.msra.mxu1 %v698_v30 }
 0xc6d   :  { %v544_v31 = vpop.permute.xlu2 %543 }
 0xc6e   :  { %v546_v33 = vmul.f32 %v544_v31, %v538_v32  ;;  %v731_v31 = vld [vmem:[#allocation12 + $0x18] sm:$0xff] }
 0xc6f   :  { %745 = vmatpush.msra.mxu2 %v731_v31  ;;  %811 = vmatpush.msra.mxu3 %v731_v31 }
 0xc70   :  { %548 = vrot.lane.b32.xlu0 %v546_v33, %s1742_s3  ;;  %v697_v33 = vld [vmem:[#allocation10 + $0x8] sm:$0xff]  ;;  %877 = vmatpush.msrb.mxu0 %v731_v31 }
 0xc71   :  { %721 = vmatpush.msra.mxu1 %v697_v33 }
 0xce2   :  { %v549_v35 = vpop.permute.xlu0 %548 }
 0xce3   :  { %v551_v36 = vadd.f32 %v549_v35, %v541_v34  ;;  %v696_v34 = vld [vmem:[#allocation10] sm:$0xff]  ;;  %v729_v35 = vld [vmem:[#allocation12 + $0x8] sm:$0xff] }
 0xce4   :  { %722 = vmatpush.msra.mxu1 %v696_v34 }
 0xce5   :  { %1442 = vtanh.f32 %v551_v36 }
 0xce6   :  { %943 = vmatpush.msrb.mxu1 %v731_v31 }
 0xceb   :  { %v1443_v37 = vpop.eup %1442 }
 0xcec   :  { %554 = vrot.lane.b32.xlu1 %v1443_v37, %s1741_s21 }
 0xd5e   :  { %v555_v38 = vpop.permute.xlu1 %554 }
 0xd5f   :  { %v557_v39 = vmul.f32 %v555_v38, %v538_v32  ;;  %v730_v32 = vld [vmem:[#allocation12 + $0x10] sm:$0xff] }
 0xd60   :  { %746 = vmatpush.msra.mxu2 %v730_v32  ;;  %812 = vmatpush.msra.mxu3 %v730_v32 }
 0xd61   :  { %559 = vrot.lane.b32.xlu2 %v557_v39, %s1742_s3  ;;  %878 = vmatpush.msrb.mxu0 %v730_v32 }
 0xd62   :  { %747 = vmatpush.msra.mxu2 %v729_v35  ;;  %813 = vmatpush.msra.mxu3 %v729_v35 }
 0xd63   :  { %879 = vmatpush.msrb.mxu0 %v729_v35  ;;  %944 = vmatpush.msrb.mxu1 %v730_v32 }
 0xd65   :  { %945 = vmatpush.msrb.mxu1 %v729_v35 }
 0xdbb   :  { %v560_v40 = vpop.permute.xlu2 %559 }
 0xdbc   :  { %562 = vst.msk [vmem:[#allocation2 + $0x5] sm:$0x1] %vm231_vm5, %v560_v40  ;;  %1358 = vmatmul.msk.f32.vlgmr.msrb.gmra.mxu3 %vm165_vm6, %v560_v40 }
 0xe3f   :  { %v583_v42 = vpop.f32.mrf.mxu3 }
 0xe40   :  { %v586_v43 = vadd.f32 %v583_v42, %v563_v41 }
 0xe42   :  { %1444 = vtanh.f32 %v586_v43  ;;  %v1359_v45 = vmul.f32 -1.442695, %v586_v43 }
 0xe44   :  { %1446 = vpow2.f32 %v1359_v45 }
 0xe48   :  { %v1445_v44 = vpop.eup %1444 }
 0xe49   :  { %609 = vrot.lane.b32.xlu0 %v1445_v44, %s1741_s21 }
 0xe4a   :  { %v1447_v46 = vpop.eup %1446 }
 0xe4b   :  { %v590_v47 = vadd.f32 1.0, %v1447_v46 }
 0xe4d   :  { %1448 = vrcp.f32 %v590_v47  ;;  %v602_v53 = vand.u32 2147483648, %v590_v47  ;;  %vm596_vm14 = vweird.f32 %v590_v47  ;;  %v600_v54 = vand.u32 2147483647, %v590_v47 }
 0xe4f   :  { %v603_v56 = vor.u32 1.1754944e-38, %v602_v53  ;;  %vm601_vm0 = vcmp.eq.f32.partialorder %v600_v54, 8.507059e+37 }
 0xe53   :  { %v1449_v48 = vpop.eup %1448 }
 0xe54   :  { %v592_v49 = vmul.f32 %v1449_v48, %v590_v47  ;;  %vm597_vm13 = vweird.f32 %v1449_v48 }
 0xe55   :  { %vm598_vm15 = vmor %vm596_vm14, %vm597_vm13 }
 0xe56   :  { %v593_v50 = vsub.f32 1.0, %v592_v49 }
 0xe58   :  { %v594_v51 = vmul.f32 %v1449_v48, %v593_v50 }
 0xe5a   :  { %v595_v52 = vadd.f32 %v1449_v48, %v594_v51 }
 0xe5c   :  { %v599_v55 = vsel %vm598_vm15, %v1449_v48, %v595_v52 }
 0xe5d   :  { %v604_v58 = vsel %vm601_vm0, %v603_v56, %v599_v55 }
 0xe5e   :  { %v607_v60 = vmul.f32 %v604_v58, %v551_v36  ;;  %v728_v36 = vld [vmem:[#allocation12] sm:$0xff] }
 0xe5f   :  { %748 = vmatpush.msra.mxu2 %v728_v36  ;;  %814 = vmatpush.msra.mxu3 %v728_v36 }
 0xe60   :  { %749 = vmatmul.f32.vlgmr.msra.gmra.mxu2 %v1740_v7  ;;  %880 = vmatpush.msrb.mxu0 %v728_v36  ;;  %v1394_v7 = vld [vmem:[%s1952_s6] ss:$0 sm:$0xff] }
 0xe61   :  { %1009 = vmatpush.msrb.mxu2 %v731_v31  ;;  %1075 = vmatpush.msrb.mxu3 %v731_v31 }
 0xe62   :  { %946 = vmatpush.msrb.mxu1 %v728_v36 }
 0xe63   :  { %1010 = vmatpush.msrb.mxu2 %v730_v32  ;;  %1076 = vmatpush.msrb.mxu3 %v730_v32 }
 0xe65   :  { %1011 = vmatpush.msrb.mxu2 %v729_v35  ;;  %1077 = vmatpush.msrb.mxu3 %v729_v35 }
 0xe67   :  { %1012 = vmatpush.msrb.mxu2 %v728_v36  ;;  %1078 = vmatpush.msrb.mxu3 %v728_v36 }
 0xebb   :  { %v610_v57 = vpop.permute.xlu0 %609 }
 0xebc   :  { %v612_v59 = vmul.f32 %v610_v57, %v604_v58 }
 0xebe   :  { %614 = vrot.lane.b32.xlu1 %v612_v59, %s1742_s3 }
 0xee3   :  { %v750_v41 = vpop.f32.mrf.mxu2 }
 0xf30   :  { %v615_v61 = vpop.permute.xlu1 %614 }
 0xf31   :  { %v617_v62 = vadd.f32 %v615_v61, %v607_v60 }
 0xf33   :  { %1450 = vtanh.f32 %v617_v62 }
 0xf39   :  { %v1451_v63 = vpop.eup %1450 }
 0xf3a   :  { %620 = vrot.lane.b32.xlu2 %v1451_v63, %s1741_s21 }
 0xf94   :  { %v621_v0 = vpop.permute.xlu2 %620 }
 0xf95   :  { %v623_v1 = vmul.f32 %v621_v0, %v604_v58 }
 0xf97   :  { %625 = vrot.lane.b32.xlu0 %v623_v1, %s1742_s3 }
0x1009   :  { %v626_v2 = vpop.permute.xlu0 %625 }
0x100a   :  { %628 = vst.msk [vmem:[#allocation2 + $0x6] sm:$0x1] %vm231_vm5, %v626_v2  ;;  %1360 = vmatmul.msk.f32.vlgmr.msra.gmra.mxu0 %vm165_vm6, %v626_v2 }
0x100b   :  { %1141 = vmatpush.msra.mxu0 %v731_v31 }
0x100d   :  { %1142 = vmatpush.msra.mxu0 %v730_v32 }
0x100f   :  { %1143 = vmatpush.msra.mxu0 %v729_v35 }
0x1011   :  { %1144 = vmatpush.msra.mxu0 %v728_v36 }
0x1087   :  { %v649_v4 = vpop.f32.mrf.mxu0 }
0x1088   :  { %v652_v5 = vadd.f32 %v649_v4, %v629_v3 }
0x108a   :  { %1452 = vtanh.f32 %v652_v5  ;;  %v1361_v8 = vmul.f32 -1.442695, %v652_v5 }
0x108c   :  { %1454 = vpow2.f32 %v1361_v8 }
0x1090   :  { %v1453_v6 = vpop.eup %1452 }
0x1091   :  { %675 = vrot.lane.b32.xlu1 %v1453_v6, %s1741_s21 }
0x1092   :  { %v1455_v9 = vpop.eup %1454 }
0x1093   :  { %v656_v10 = vadd.f32 1.0, %v1455_v9 }
0x1095   :  { %1456 = vrcp.f32 %v656_v10  ;;  %v668_v16 = vand.u32 2147483648, %v656_v10  ;;  %vm662_vm2 = vweird.f32 %v656_v10  ;;  %v666_v17 = vand.u32 2147483647, %v656_v10 }
0x1097   :  { %v669_v19 = vor.u32 1.1754944e-38, %v668_v16  ;;  %vm667_vm4 = vcmp.eq.f32.partialorder %v666_v17, 8.507059e+37 }
0x109b   :  { %v1457_v11 = vpop.eup %1456 }
0x109c   :  { %v658_v12 = vmul.f32 %v1457_v11, %v656_v10  ;;  %vm663_vm1 = vweird.f32 %v1457_v11 }
0x109d   :  { %vm664_vm3 = vmor %vm662_vm2, %vm663_vm1 }
0x109e   :  { %v659_v13 = vsub.f32 1.0, %v658_v12 }
0x10a0   :  { %v660_v14 = vmul.f32 %v1457_v11, %v659_v13 }
0x10a2   :  { %v661_v15 = vadd.f32 %v1457_v11, %v660_v14 }
0x10a4   :  { %v665_v18 = vsel %vm664_vm3, %v1457_v11, %v661_v15 }
0x10a5   :  { %v670_v21 = vsel %vm667_vm4, %v669_v19, %v665_v18 }
0x10a6   :  { %v673_v23 = vmul.f32 %v670_v21, %v617_v62 }
0x1103   :  { %v676_v20 = vpop.permute.xlu1 %675 }
0x1104   :  { %v678_v22 = vmul.f32 %v676_v20, %v670_v21 }
0x1106   :  { %680 = vrot.lane.b32.xlu2 %v678_v22, %s1742_s3 }
0x1160   :  { %v681_v24 = vpop.permute.xlu2 %680 }
0x1161   :  { %v683_v25 = vadd.f32 %v681_v24, %v673_v23 }
0x1163   :  { %1458 = vtanh.f32 %v683_v25 }
0x1169   :  { %v1459_v26 = vpop.eup %1458 }
0x116a   :  { %686 = vrot.lane.b32.xlu0 %v1459_v26, %s1741_s21 }
0x11dc   :  { %v687_v27 = vpop.permute.xlu0 %686 }
0x11dd   :  { %v689_v28 = vmul.f32 %v687_v27, %v670_v21 }
0x11df   :  { %691 = vrot.lane.b32.xlu1 %v689_v28, %s1742_s3 }
0x1251   :  { %v692_v37 = vpop.permute.xlu1 %691 }
0x1252   :  { %694 = vst.msk [vmem:[#allocation2 + $0x7] sm:$0x1] %vm231_vm5, %v692_v37 }
0x1259   :  { %v695_v38 = vld [vmem:[#allocation2] sm:$0xff] }
0x125a   :  { %1362 = vmatmul.msk.f32.vlgmr.msra.gmra.mxu1 %vm165_vm6, %v695_v38 }
0x125b   :  { %1207 = vmatpush.msra.mxu1 %v731_v31 }
0x125d   :  { %1208 = vmatpush.msra.mxu1 %v730_v32 }
0x125f   :  { %1209 = vmatpush.msra.mxu1 %v729_v35 }
0x1261   :  { %1210 = vmatpush.msra.mxu1 %v728_v36 }
0x12d7   :  { %v724_v39 = vpop.f32.mrf.mxu1 }
0x12d8   :  { %v725_v40 = vadd.f32 %v1394_v7, %v724_v39 }
0x12da   :  { %727 = vst [vmem:[#allocation3] sm:$0xff] %v725_v40 }
0x12e1   :  { %v732_v42 = vld [vmem:[#allocation3] sm:$0x1]  ;;  %v796_v3 = vld [vmem:[#allocation3 + $0x1] sm:$0x1]  ;;  %v862_v30 = vld [vmem:[#allocation3 + $0x2] sm:$0x1] }
0x12e2   :  { %v753_v43 = vadd.f32 %v750_v41, %v732_v42 }
0x12e4   :  { %1460 = vtanh.f32 %v753_v43  ;;  %v1363_v45 = vmul.f32 -1.442695, %v753_v43 }
0x12e6   :  { %1462 = vpow2.f32 %v1363_v45 }
0x12ea   :  { %v1461_v44 = vpop.eup %1460 }
0x12eb   :  { %776 = vrot.lane.b32.xlu2 %v1461_v44, %s1741_s21 }
0x12ec   :  { %v1463_v46 = vpop.eup %1462 }
0x12ed   :  { %v757_v47 = vadd.f32 1.0, %v1463_v46 }
0x12ef   :  { %1464 = vrcp.f32 %v757_v47  ;;  %v769_v53 = vand.u32 2147483648, %v757_v47  ;;  %vm763_vm8 = vweird.f32 %v757_v47  ;;  %v767_v54 = vand.u32 2147483647, %v757_v47 }
0x12f1   :  { %v770_v56 = vor.u32 1.1754944e-38, %v769_v53  ;;  %vm768_vm10 = vcmp.eq.f32.partialorder %v767_v54, 8.507059e+37 }
0x12f5   :  { %v1465_v48 = vpop.eup %1464 }
0x12f6   :  { %v759_v49 = vmul.f32 %v1465_v48, %v757_v47  ;;  %vm764_vm7 = vweird.f32 %v1465_v48 }
0x12f7   :  { %vm765_vm9 = vmor %vm763_vm8, %vm764_vm7 }
0x12f8   :  { %v760_v50 = vsub.f32 1.0, %v759_v49 }
0x12fa   :  { %v761_v51 = vmul.f32 %v1465_v48, %v760_v50 }
0x12fc   :  { %v762_v52 = vadd.f32 %v1465_v48, %v761_v51 }
0x12fe   :  { %v766_v55 = vsel %vm765_vm9, %v1465_v48, %v762_v52 }
0x12ff   :  { %v771_v58 = vsel %vm768_vm10, %v770_v56, %v766_v55  ;;  %v928_v55 = vld [vmem:[#allocation3 + $0x3] sm:$0x1] }
0x1300   :  { %v774_v60 = vmul.f32 0.0, %v771_v58 }
0x1345   :  { %v777_v57 = vpop.permute.xlu2 %776 }
0x1346   :  { %v779_v59 = vmul.f32 %v777_v57, %v771_v58 }
0x1348   :  { %781 = vrot.lane.b32.xlu0 %v779_v59, %s1742_s3 }
0x13ba   :  { %v782_v61 = vpop.permute.xlu0 %781 }
0x13bb   :  { %v784_v62 = vadd.f32 %v782_v61, %v774_v60 }
0x13bd   :  { %1466 = vtanh.f32 %v784_v62 }
0x13c3   :  { %v1467_v63 = vpop.eup %1466 }
0x13c4   :  { %787 = vrot.lane.b32.xlu1 %v1467_v63, %s1741_s21 }
0x1436   :  { %v788_v0 = vpop.permute.xlu1 %787 }
0x1437   :  { %v790_v1 = vmul.f32 %v788_v0, %v771_v58 }
0x1439   :  { %792 = vrot.lane.b32.xlu2 %v790_v1, %s1742_s3 }
0x1493   :  { %v793_v2 = vpop.permute.xlu2 %792 }
0x1494   :  { %795 = vst.msk [vmem:[#allocation15] sm:$0x1] %vm231_vm5, %v793_v2  ;;  %1364 = vmatmul.msk.f32.vlgmr.msra.gmra.mxu3 %vm165_vm6, %v793_v2 }
0x1517   :  { %v816_v4 = vpop.f32.mrf.mxu3 }
0x1518   :  { %v819_v5 = vadd.f32 %v816_v4, %v796_v3 }
0x151a   :  { %1468 = vtanh.f32 %v819_v5  ;;  %v1365_v8 = vmul.f32 -1.442695, %v819_v5 }
0x151c   :  { %1470 = vpow2.f32 %v1365_v8 }
0x1520   :  { %v1469_v6 = vpop.eup %1468 }
0x1521   :  { %842 = vrot.lane.b32.xlu0 %v1469_v6, %s1741_s21 }
0x1522   :  { %v1471_v9 = vpop.eup %1470 }
0x1523   :  { %v823_v10 = vadd.f32 1.0, %v1471_v9 }
0x1525   :  { %1472 = vrcp.f32 %v823_v10  ;;  %v835_v16 = vand.u32 2147483648, %v823_v10  ;;  %vm829_vm12 = vweird.f32 %v823_v10  ;;  %v833_v17 = vand.u32 2147483647, %v823_v10 }
0x1527   :  { %v836_v19 = vor.u32 1.1754944e-38, %v835_v16  ;;  %vm834_vm14 = vcmp.eq.f32.partialorder %v833_v17, 8.507059e+37 }
0x152b   :  { %v1473_v11 = vpop.eup %1472 }
0x152c   :  { %v825_v12 = vmul.f32 %v1473_v11, %v823_v10  ;;  %vm830_vm11 = vweird.f32 %v1473_v11 }
0x152d   :  { %vm831_vm13 = vmor %vm829_vm12, %vm830_vm11 }
0x152e   :  { %v826_v13 = vsub.f32 1.0, %v825_v12 }
0x1530   :  { %v827_v14 = vmul.f32 %v1473_v11, %v826_v13 }
0x1532   :  { %v828_v15 = vadd.f32 %v1473_v11, %v827_v14 }
0x1534   :  { %v832_v18 = vsel %vm831_vm13, %v1473_v11, %v828_v15 }
0x1535   :  { %v837_v21 = vsel %vm834_vm14, %v836_v19, %v832_v18  ;;  %v994_v18 = vld [vmem:[#allocation3 + $0x4] sm:$0x1] }
0x1536   :  { %v840_v23 = vmul.f32 %v837_v21, %v784_v62 }
0x1593   :  { %v843_v20 = vpop.permute.xlu0 %842 }
0x1594   :  { %v845_v22 = vmul.f32 %v843_v20, %v837_v21 }
0x1596   :  { %847 = vrot.lane.b32.xlu1 %v845_v22, %s1742_s3 }
0x1608   :  { %v848_v24 = vpop.permute.xlu1 %847 }
0x1609   :  { %v850_v25 = vadd.f32 %v848_v24, %v840_v23 }
0x160b   :  { %1474 = vtanh.f32 %v850_v25 }
0x1611   :  { %v1475_v26 = vpop.eup %1474 }
0x1612   :  { %853 = vrot.lane.b32.xlu2 %v1475_v26, %s1741_s21 }
0x166c   :  { %v854_v27 = vpop.permute.xlu2 %853 }
0x166d   :  { %v856_v28 = vmul.f32 %v854_v27, %v837_v21 }
0x166f   :  { %858 = vrot.lane.b32.xlu0 %v856_v28, %s1742_s3 }
0x16e1   :  { %v859_v29 = vpop.permute.xlu0 %858 }
0x16e2   :  { %861 = vst.msk [vmem:[#allocation15 + $0x1] sm:$0x1] %vm231_vm5, %v859_v29  ;;  %1366 = vmatmul.msk.f32.vlgmr.msrb.gmra.mxu0 %vm165_vm6, %v859_v29 }
0x175f   :  { %v882_v31 = vpop.f32.mrf.mxu0 }
0x1760   :  { %v885_v32 = vadd.f32 %v882_v31, %v862_v30 }
0x1762   :  { %1476 = vtanh.f32 %v885_v32  ;;  %v1367_v34 = vmul.f32 -1.442695, %v885_v32 }
0x1764   :  { %1478 = vpow2.f32 %v1367_v34 }
0x1768   :  { %v1477_v33 = vpop.eup %1476 }
0x1769   :  { %908 = vrot.lane.b32.xlu1 %v1477_v33, %s1741_s21 }
0x176a   :  { %v1479_v35 = vpop.eup %1478 }
0x176b   :  { %v889_v36 = vadd.f32 1.0, %v1479_v35 }
0x176d   :  { %1480 = vrcp.f32 %v889_v36  ;;  %v901_v41 = vand.u32 2147483648, %v889_v36  ;;  %vm895_vm0 = vweird.f32 %v889_v36  ;;  %v899_v42 = vand.u32 2147483647, %v889_v36 }
0x176f   :  { %v902_v44 = vor.u32 1.1754944e-38, %v901_v41  ;;  %vm900_vm2 = vcmp.eq.f32.partialorder %v899_v42, 8.507059e+37 }
0x1773   :  { %v1481_v37 = vpop.eup %1480 }
0x1774   :  { %v891_v38 = vmul.f32 %v1481_v37, %v889_v36  ;;  %vm896_vm15 = vweird.f32 %v1481_v37 }
0x1775   :  { %vm897_vm1 = vmor %vm895_vm0, %vm896_vm15 }
0x1776   :  { %v892_v7 = vsub.f32 1.0, %v891_v38 }
0x1778   :  { %v893_v39 = vmul.f32 %v1481_v37, %v892_v7 }
0x177a   :  { %v894_v40 = vadd.f32 %v1481_v37, %v893_v39 }
0x177c   :  { %v898_v43 = vsel %vm897_vm1, %v1481_v37, %v894_v40 }
0x177d   :  { %v903_v46 = vsel %vm900_vm2, %v902_v44, %v898_v43  ;;  %v1060_v43 = vld [vmem:[#allocation3 + $0x5] sm:$0x1] }
0x177e   :  { %v906_v48 = vmul.f32 %v903_v46, %v850_v25 }
0x17db   :  { %v909_v45 = vpop.permute.xlu1 %908 }
0x17dc   :  { %v911_v47 = vmul.f32 %v909_v45, %v903_v46 }
0x17de   :  { %913 = vrot.lane.b32.xlu2 %v911_v47, %s1742_s3 }
0x1838   :  { %v914_v49 = vpop.permute.xlu2 %913 }
0x1839   :  { %v916_v50 = vadd.f32 %v914_v49, %v906_v48 }
0x183b   :  { %1482 = vtanh.f32 %v916_v50 }
0x1841   :  { %v1483_v51 = vpop.eup %1482 }
0x1842   :  { %919 = vrot.lane.b32.xlu0 %v1483_v51, %s1741_s21 }
0x18b4   :  { %v920_v52 = vpop.permute.xlu0 %919 }
0x18b5   :  { %v922_v53 = vmul.f32 %v920_v52, %v903_v46 }
0x18b7   :  { %924 = vrot.lane.b32.xlu1 %v922_v53, %s1742_s3 }
0x1929   :  { %v925_v54 = vpop.permute.xlu1 %924 }
0x192a   :  { %927 = vst.msk [vmem:[#allocation15 + $0x2] sm:$0x1] %vm231_vm5, %v925_v54  ;;  %1368 = vmatmul.msk.f32.vlgmr.msrb.gmra.mxu1 %vm165_vm6, %v925_v54 }
0x19a7   :  { %v948_v56 = vpop.f32.mrf.mxu1 }
0x19a8   :  { %v951_v57 = vadd.f32 %v948_v56, %v928_v55 }
0x19aa   :  { %1484 = vtanh.f32 %v951_v57  ;;  %v1369_v59 = vmul.f32 -1.442695, %v951_v57 }
0x19ac   :  { %1486 = vpow2.f32 %v1369_v59 }
0x19b0   :  { %v1485_v58 = vpop.eup %1484 }
0x19b1   :  { %974 = vrot.lane.b32.xlu2 %v1485_v58, %s1741_s21 }
0x19b2   :  { %v1487_v60 = vpop.eup %1486 }
0x19b3   :  { %v955_v61 = vadd.f32 1.0, %v1487_v60 }
0x19b5   :  { %1488 = vrcp.f32 %v955_v61  ;;  %v967_v3 = vand.u32 2147483648, %v955_v61  ;;  %vm961_vm4 = vweird.f32 %v955_v61  ;;  %v965_v4 = vand.u32 2147483647, %v955_v61 }
0x19b7   :  { %v968_v6 = vor.u32 1.1754944e-38, %v967_v3  ;;  %vm966_vm8 = vcmp.eq.f32.partialorder %v965_v4, 8.507059e+37 }
0x19bb   :  { %v1489_v62 = vpop.eup %1488 }
0x19bc   :  { %v957_v63 = vmul.f32 %v1489_v62, %v955_v61  ;;  %vm962_vm3 = vweird.f32 %v1489_v62 }
0x19bd   :  { %vm963_vm7 = vmor %vm961_vm4, %vm962_vm3 }
0x19be   :  { %v958_v0 = vsub.f32 1.0, %v957_v63 }
0x19c0   :  { %v959_v1 = vmul.f32 %v1489_v62, %v958_v0 }
0x19c2   :  { %v960_v2 = vadd.f32 %v1489_v62, %v959_v1 }
0x19c4   :  { %v964_v5 = vsel %vm963_vm7, %v1489_v62, %v960_v2 }
0x19c5   :  { %v969_v9 = vsel %vm966_vm8, %v968_v6, %v964_v5  ;;  %v1126_v5 = vld [vmem:[#allocation3 + $0x6] sm:$0x1] }
0x19c6   :  { %v972_v11 = vmul.f32 %v969_v9, %v916_v50 }
0x1a0b   :  { %v975_v8 = vpop.permute.xlu2 %974 }
0x1a0c   :  { %v977_v10 = vmul.f32 %v975_v8, %v969_v9 }
0x1a0e   :  { %979 = vrot.lane.b32.xlu0 %v977_v10, %s1742_s3 }
0x1a80   :  { %v980_v12 = vpop.permute.xlu0 %979 }
0x1a81   :  { %v982_v13 = vadd.f32 %v980_v12, %v972_v11 }
0x1a83   :  { %1490 = vtanh.f32 %v982_v13 }
0x1a89   :  { %v1491_v14 = vpop.eup %1490 }
0x1a8a   :  { %985 = vrot.lane.b32.xlu1 %v1491_v14, %s1741_s21 }
0x1afc   :  { %v986_v15 = vpop.permute.xlu1 %985 }
0x1afd   :  { %v988_v16 = vmul.f32 %v986_v15, %v969_v9 }
0x1aff   :  { %990 = vrot.lane.b32.xlu2 %v988_v16, %s1742_s3 }
0x1b59   :  { %v991_v17 = vpop.permute.xlu2 %990 }
0x1b5a   :  { %993 = vst.msk [vmem:[#allocation15 + $0x3] sm:$0x1] %vm231_vm5, %v991_v17  ;;  %1370 = vmatmul.msk.f32.vlgmr.msrb.gmra.mxu2 %vm165_vm6, %v991_v17 }
0x1bdd   :  { %v1014_v19 = vpop.f32.mrf.mxu2 }
0x1bde   :  { %v1017_v20 = vadd.f32 %v1014_v19, %v994_v18 }
0x1be0   :  { %1492 = vtanh.f32 %v1017_v20  ;;  %v1371_v22 = vmul.f32 -1.442695, %v1017_v20 }
0x1be2   :  { %1494 = vpow2.f32 %v1371_v22 }
0x1be6   :  { %v1493_v21 = vpop.eup %1492 }
0x1be7   :  { %1040 = vrot.lane.b32.xlu0 %v1493_v21, %s1741_s21 }
0x1be8   :  { %v1495_v23 = vpop.eup %1494 }
0x1be9   :  { %v1021_v24 = vadd.f32 1.0, %v1495_v23 }
0x1beb   :  { %1496 = vrcp.f32 %v1021_v24  ;;  %v1033_v30 = vand.u32 2147483648, %v1021_v24  ;;  %vm1027_vm10 = vweird.f32 %v1021_v24  ;;  %v1031_v31 = vand.u32 2147483647, %v1021_v24 }
0x1bed   :  { %v1034_v33 = vor.u32 1.1754944e-38, %v1033_v30  ;;  %vm1032_vm12 = vcmp.eq.f32.partialorder %v1031_v31, 8.507059e+37 }
0x1bf1   :  { %v1497_v25 = vpop.eup %1496 }
0x1bf2   :  { %v1023_v26 = vmul.f32 %v1497_v25, %v1021_v24  ;;  %vm1028_vm9 = vweird.f32 %v1497_v25 }
0x1bf3   :  { %vm1029_vm11 = vmor %vm1027_vm10, %vm1028_vm9 }
0x1bf4   :  { %v1024_v27 = vsub.f32 1.0, %v1023_v26 }
0x1bf6   :  { %v1025_v28 = vmul.f32 %v1497_v25, %v1024_v27 }
0x1bf8   :  { %v1026_v29 = vadd.f32 %v1497_v25, %v1025_v28 }
0x1bfa   :  { %v1030_v32 = vsel %vm1029_vm11, %v1497_v25, %v1026_v29 }
0x1bfb   :  { %v1035_v35 = vsel %vm1032_vm12, %v1034_v33, %v1030_v32  ;;  %v1192_v32 = vld [vmem:[#allocation3 + $0x7] sm:$0x1] }
0x1bfc   :  { %v1038_v37 = vmul.f32 %v1035_v35, %v982_v13 }
0x1c59   :  { %v1041_v34 = vpop.permute.xlu0 %1040 }
0x1c5a   :  { %v1043_v36 = vmul.f32 %v1041_v34, %v1035_v35 }
0x1c5c   :  { %1045 = vrot.lane.b32.xlu1 %v1043_v36, %s1742_s3 }
0x1cce   :  { %v1046_v38 = vpop.permute.xlu1 %1045 }
0x1ccf   :  { %v1048_v7 = vadd.f32 %v1046_v38, %v1038_v37 }
0x1cd1   :  { %1498 = vtanh.f32 %v1048_v7 }
0x1cd7   :  { %v1499_v39 = vpop.eup %1498 }
0x1cd8   :  { %1051 = vrot.lane.b32.xlu2 %v1499_v39, %s1741_s21 }
0x1d32   :  { %v1052_v40 = vpop.permute.xlu2 %1051 }
0x1d33   :  { %v1054_v41 = vmul.f32 %v1052_v40, %v1035_v35 }
0x1d35   :  { %1056 = vrot.lane.b32.xlu0 %v1054_v41, %s1742_s3 }
0x1da7   :  { %v1057_v42 = vpop.permute.xlu0 %1056 }
0x1da8   :  { %1059 = vst.msk [vmem:[#allocation15 + $0x4] sm:$0x1] %vm231_vm5, %v1057_v42  ;;  %1372 = vmatmul.msk.f32.vlgmr.msrb.gmra.mxu3 %vm165_vm6, %v1057_v42 }
0x1e2b   :  { %v1080_v44 = vpop.f32.mrf.mxu3 }
0x1e2c   :  { %v1083_v45 = vadd.f32 %v1080_v44, %v1060_v43 }
0x1e2e   :  { %1500 = vtanh.f32 %v1083_v45  ;;  %v1373_v47 = vmul.f32 -1.442695, %v1083_v45 }
0x1e30   :  { %1502 = vpow2.f32 %v1373_v47 }
0x1e34   :  { %v1501_v46 = vpop.eup %1500 }
0x1e35   :  { %1106 = vrot.lane.b32.xlu1 %v1501_v46, %s1741_s21 }
0x1e36   :  { %v1503_v48 = vpop.eup %1502 }
0x1e37   :  { %v1087_v49 = vadd.f32 1.0, %v1503_v48 }
0x1e39   :  { %1504 = vrcp.f32 %v1087_v49  ;;  %v1099_v55 = vand.u32 2147483648, %v1087_v49  ;;  %vm1093_vm14 = vweird.f32 %v1087_v49  ;;  %v1097_v56 = vand.u32 2147483647, %v1087_v49 }
0x1e3b   :  { %v1100_v58 = vor.u32 1.1754944e-38, %v1099_v55  ;;  %vm1098_vm0 = vcmp.eq.f32.partialorder %v1097_v56, 8.507059e+37  ;;  %v1262_v56 = vld [vmem:[#allocation13 + $0x18] sm:$0xff] }
0x1e3c   :  { %1282 = vmatpush.msra.mxu2 %v1262_v56 }
0x1e3f   :  { %v1505_v50 = vpop.eup %1504 }
0x1e40   :  { %v1089_v51 = vmul.f32 %v1505_v50, %v1087_v49  ;;  %vm1094_vm13 = vweird.f32 %v1505_v50 }
0x1e41   :  { %vm1095_vm15 = vmor %vm1093_vm14, %vm1094_vm13 }
0x1e42   :  { %v1090_v52 = vsub.f32 1.0, %v1089_v51 }
0x1e44   :  { %v1091_v53 = vmul.f32 %v1505_v50, %v1090_v52 }
0x1e46   :  { %v1092_v54 = vadd.f32 %v1505_v50, %v1091_v53 }
0x1e48   :  { %v1096_v57 = vsel %vm1095_vm15, %v1505_v50, %v1092_v54 }
0x1e49   :  { %v1101_v60 = vsel %vm1098_vm0, %v1100_v58, %v1096_v57  ;;  %v1261_v57 = vld [vmem:[#allocation13 + $0x10] sm:$0xff]  ;;  %v1260_v58 = vld [vmem:[#allocation13 + $0x8] sm:$0xff] }
0x1e4a   :  { %v1104_v62 = vmul.f32 %v1101_v60, %v1048_v7  ;;  %1283 = vmatpush.msra.mxu2 %v1261_v57 }
0x1e4c   :  { %1284 = vmatpush.msra.mxu2 %v1260_v58 }
0x1ea7   :  { %v1107_v59 = vpop.permute.xlu1 %1106 }
0x1ea8   :  { %v1109_v61 = vmul.f32 %v1107_v59, %v1101_v60  ;;  %v1259_v59 = vld [vmem:[#allocation13] sm:$0xff] }
0x1ea9   :  { %1285 = vmatpush.msra.mxu2 %v1259_v59 }
0x1eaa   :  { %1111 = vrot.lane.b32.xlu2 %v1109_v61, %s1742_s3 }
0x1f04   :  { %v1112_v63 = vpop.permute.xlu2 %1111 }
0x1f05   :  { %v1114_v0 = vadd.f32 %v1112_v63, %v1104_v62  ;;  %v1395_v62 = vld [vmem:[%s1954_s8] ss:$0 sm:$0xff]  ;;  %s1328_s8 = sshll.u32 %s1956_s10, 4  ;;  %s1329_s8 = int_to_ptr.hbm [resolvable:$true] %s1328_s8 }
0x1f07   :  { %1506 = vtanh.f32 %v1114_v0 }
0x1f0d   :  { %v1507_v1 = vpop.eup %1506 }
0x1f0e   :  { %1117 = vrot.lane.b32.xlu0 %v1507_v1, %s1741_s21 }
0x1f80   :  { %v1118_v2 = vpop.permute.xlu0 %1117 }
0x1f81   :  { %v1120_v3 = vmul.f32 %v1118_v2, %v1101_v60 }
0x1f83   :  { %1122 = vrot.lane.b32.xlu1 %v1120_v3, %s1742_s3 }
0x1ff5   :  { %v1123_v4 = vpop.permute.xlu1 %1122 }
0x1ff6   :  { %1125 = vst.msk [vmem:[#allocation15 + $0x5] sm:$0x1] %vm231_vm5, %v1123_v4  ;;  %1374 = vmatmul.msk.f32.vlgmr.msra.gmra.mxu0 %vm165_vm6, %v1123_v4 }
0x2073   :  { %v1146_v6 = vpop.f32.mrf.mxu0 }
0x2074   :  { %v1149_v8 = vadd.f32 %v1146_v6, %v1126_v5 }
0x2076   :  { %1508 = vtanh.f32 %v1149_v8  ;;  %v1375_v10 = vmul.f32 -1.442695, %v1149_v8 }
0x2078   :  { %1510 = vpow2.f32 %v1375_v10 }
0x207c   :  { %v1509_v9 = vpop.eup %1508 }
0x207d   :  { %1172 = vrot.lane.b32.xlu2 %v1509_v9, %s1741_s21 }
0x207e   :  { %v1511_v11 = vpop.eup %1510 }
0x207f   :  { %v1153_v12 = vadd.f32 1.0, %v1511_v11 }
0x2081   :  { %1512 = vrcp.f32 %v1153_v12  ;;  %v1165_v18 = vand.u32 2147483648, %v1153_v12  ;;  %vm1159_vm2 = vweird.f32 %v1153_v12  ;;  %v1163_v19 = vand.u32 2147483647, %v1153_v12 }
0x2083   :  { %v1166_v21 = vor.u32 1.1754944e-38, %v1165_v18  ;;  %vm1164_vm4 = vcmp.eq.f32.partialorder %v1163_v19, 8.507059e+37 }
0x2087   :  { %v1513_v13 = vpop.eup %1512 }
0x2088   :  { %v1155_v14 = vmul.f32 %v1513_v13, %v1153_v12  ;;  %vm1160_vm1 = vweird.f32 %v1513_v13 }
0x2089   :  { %vm1161_vm3 = vmor %vm1159_vm2, %vm1160_vm1 }
0x208a   :  { %v1156_v15 = vsub.f32 1.0, %v1155_v14 }
0x208c   :  { %v1157_v16 = vmul.f32 %v1513_v13, %v1156_v15 }
0x208e   :  { %v1158_v17 = vadd.f32 %v1513_v13, %v1157_v16 }
0x2090   :  { %v1162_v20 = vsel %vm1161_vm3, %v1513_v13, %v1158_v17 }
0x2091   :  { %v1167_v23 = vsel %vm1164_vm4, %v1166_v21, %v1162_v20 }
0x2092   :  { %v1170_v25 = vmul.f32 %v1167_v23, %v1114_v0 }
0x20d7   :  { %v1173_v22 = vpop.permute.xlu2 %1172 }
0x20d8   :  { %v1175_v24 = vmul.f32 %v1173_v22, %v1167_v23 }
0x20da   :  { %1177 = vrot.lane.b32.xlu0 %v1175_v24, %s1742_s3 }
0x214c   :  { %v1178_v26 = vpop.permute.xlu0 %1177 }
0x214d   :  { %v1180_v27 = vadd.f32 %v1178_v26, %v1170_v25 }
0x214f   :  { %1514 = vtanh.f32 %v1180_v27 }
0x2155   :  { %v1515_v28 = vpop.eup %1514 }
0x2156   :  { %1183 = vrot.lane.b32.xlu1 %v1515_v28, %s1741_s21 }
0x21c8   :  { %v1184_v29 = vpop.permute.xlu1 %1183 }
0x21c9   :  { %v1186_v30 = vmul.f32 %v1184_v29, %v1167_v23 }
0x21cb   :  { %1188 = vrot.lane.b32.xlu2 %v1186_v30, %s1742_s3 }
0x2225   :  { %v1189_v31 = vpop.permute.xlu2 %1188 }
0x2226   :  { %1191 = vst.msk [vmem:[#allocation15 + $0x6] sm:$0x1] %vm231_vm5, %v1189_v31  ;;  %1376 = vmatmul.msk.f32.vlgmr.msra.gmra.mxu1 %vm165_vm6, %v1189_v31 }
0x22a3   :  { %v1212_v33 = vpop.f32.mrf.mxu1 }
0x22a4   :  { %v1215_v34 = vadd.f32 %v1212_v33, %v1192_v32 }
0x22a6   :  { %1516 = vtanh.f32 %v1215_v34  ;;  %v1377_v36 = vmul.f32 -1.442695, %v1215_v34 }
0x22a8   :  { %1518 = vpow2.f32 %v1377_v36 }
0x22ac   :  { %v1517_v35 = vpop.eup %1516 }
0x22ad   :  { %1238 = vrot.lane.b32.xlu0 %v1517_v35, %s1741_s21 }
0x22ae   :  { %v1519_v37 = vpop.eup %1518 }
0x22af   :  { %v1219_v38 = vadd.f32 1.0, %v1519_v37 }
0x22b1   :  { %1520 = vrcp.f32 %v1219_v38  ;;  %v1231_v43 = vand.u32 2147483648, %v1219_v38  ;;  %vm1225_vm8 = vweird.f32 %v1219_v38  ;;  %v1229_v44 = vand.u32 2147483647, %v1219_v38 }
0x22b3   :  { %v1232_v46 = vor.u32 1.1754944e-38, %v1231_v43  ;;  %vm1230_vm10 = vcmp.eq.f32.partialorder %v1229_v44, 8.507059e+37 }
0x22b7   :  { %v1521_v7 = vpop.eup %1520 }
0x22b8   :  { %v1221_v39 = vmul.f32 %v1521_v7, %v1219_v38  ;;  %vm1226_vm7 = vweird.f32 %v1521_v7 }
0x22b9   :  { %vm1227_vm9 = vmor %vm1225_vm8, %vm1226_vm7 }
0x22ba   :  { %v1222_v40 = vsub.f32 1.0, %v1221_v39 }
0x22bc   :  { %v1223_v41 = vmul.f32 %v1521_v7, %v1222_v40 }
0x22be   :  { %v1224_v42 = vadd.f32 %v1521_v7, %v1223_v41 }
0x22c0   :  { %v1228_v45 = vsel %vm1227_vm9, %v1521_v7, %v1224_v42 }
0x22c1   :  { %v1233_v48 = vsel %vm1230_vm10, %v1232_v46, %v1228_v45 }
0x22c2   :  { %v1236_v50 = vmul.f32 %v1233_v48, %v1180_v27 }
0x231f   :  { %v1239_v47 = vpop.permute.xlu0 %1238 }
0x2320   :  { %v1241_v49 = vmul.f32 %v1239_v47, %v1233_v48 }
0x2322   :  { %1243 = vrot.lane.b32.xlu1 %v1241_v49, %s1742_s3 }
0x2394   :  { %v1244_v51 = vpop.permute.xlu1 %1243 }
0x2395   :  { %v1246_v52 = vadd.f32 %v1244_v51, %v1236_v50 }
0x2397   :  { %1522 = vtanh.f32 %v1246_v52 }
0x239d   :  { %v1523_v53 = vpop.eup %1522 }
0x239e   :  { %1249 = vrot.lane.b32.xlu2 %v1523_v53, %s1741_s21 }
0x23f8   :  { %v1250_v54 = vpop.permute.xlu2 %1249 }
0x23f9   :  { %v1252_v55 = vmul.f32 %v1250_v54, %v1233_v48 }
0x23fb   :  { %1254 = vrot.lane.b32.xlu0 %v1252_v55, %s1742_s3 }
0x246d   :  { %v1255_v60 = vpop.permute.xlu0 %1254 }
0x246e   :  { %1257 = vst.msk [vmem:[#allocation15 + $0x7] sm:$0x1] %vm231_vm5, %v1255_v60 }
0x246f   :  { %1320 = dma.vmem_to_hbm [thread:$0]  %s1316_s26, 128, %s1318_s25, [#allocation6]  }
0x2475   :  { %v1258_v61 = vld [vmem:[#allocation15] sm:$0xff] }
0x2476   :  { %1378 = vmatmul.msk.f32.vlgmr.msra.gmra.mxu2 %vm165_vm6, %v1258_v61 }
0x24f9   :  { %v1287_v63 = vpop.f32.mrf.mxu2 }
0x24fa   :  { %v1288_v0 = vadd.f32 %v1395_v62, %v1287_v63 }
0x24fc   :  { %v1379_v1 = vmul.f32 -1.442695, %v1288_v0 }
0x24fe   :  { %1524 = vpow2.f32 %v1379_v1 }
0x2504   :  { %v1525_v2 = vpop.eup %1524 }
0x2505   :  { %v1293_v3 = vadd.f32 1.0, %v1525_v2 }
0x2507   :  { %1526 = vrcp.f32 %v1293_v3  ;;  %v1305_v8 = vand.u32 2147483648, %v1293_v3  ;;  %v1303_v10 = vand.u32 2147483647, %v1293_v3  ;;  %vm1299_vm6 = vweird.f32 %v1293_v3 }
0x2509   :  { %v1306_v12 = vor.u32 1.1754944e-38, %v1305_v8  ;;  %vm1304_vm12 = vcmp.eq.f32.partialorder %v1303_v10, 8.507059e+37 }
0x250d   :  { %v1527_v4 = vpop.eup %1526 }
0x250e   :  { %v1295_v5 = vmul.f32 %v1527_v4, %v1293_v3  ;;  %vm1300_vm5 = vweird.f32 %v1527_v4 }
0x250f   :  { %vm1301_vm11 = vmor %vm1299_vm6, %vm1300_vm5 }
0x2510   :  { %v1296_v6 = vsub.f32 1.0, %v1295_v5 }
0x2512   :  { %v1297_v9 = vmul.f32 %v1527_v4, %v1296_v6 }
0x2514   :  { %v1298_v11 = vadd.f32 %v1527_v4, %v1297_v9 }
0x2516   :  { %v1302_v13 = vsel %vm1301_vm11, %v1527_v4, %v1298_v11 }
0x2517   :  { %v1307_v14 = vsel %vm1304_vm12, %v1306_v12, %v1302_v13 }
0x2518   :  { %1309 = vst [vmem:[#allocation16] sm:$0xff] %v1307_v14 }
0x2519   :  { %1331 = dma.vmem_to_hbm [thread:$0]  %s1327_s28, 128, %s1329_s8, [#allocation17]  }
0x251a   :  { %1728 = dma.done.wait [#allocation6], 128  }
0x251b   :  { %1729 = vsyncadd [#allocation6], 4294967168 }
0x251c   :  { %1730 = dma.done.wait [#allocation17], 128  }
0x251d   :  { %1731 = vsyncadd [#allocation17], 4294967168 }
0x251e   :  { %1340 = vsyncpa [#allocation5], 1 }
0x251f   :  { %1341 = vsyncpa [#allocation8], 1 }
0x2520   :  { %1342 = vsyncpa [#allocation11], 1 }
0x2521   :  { %1343 = vsyncpa [#allocation14], 1 }
0x2522   :  { %1344 = vsyncpa [#allocation6], 1 }
0x2523   :  { %1345 = vsyncpa [#allocation17], 1 }

</bundles_post_ra>
